<compile_context>
chip_gen: v7x
topology: tpu7x:2x2x1
jax: 0.10.0
libtpu: 0.0.40
codegen_flags: <defaults>
</compile_context>

<pallas_src>
import jax
import jax.numpy as jnp
from jax.experimental import pallas as pl
from jax.experimental.pallas import tpu as pltpu


# ----------------------------------------------------------------------------
# Kernel
# ----------------------------------------------------------------------------
def _fused_mlp_kernel(x_ref, w1_ref, b1_ref, w2_ref, b2_ref, o_ref,
                      acc_ref, h_cache_ref):
    """One (bm, bn) output block; grid = (batch_i, dout_j, hidden_k).

    x_ref       : (bm, D_in)    f32  (cast to bf16 in-kernel for the MXU)
    w1_ref      : (D_in, bh)    bf16
    b1_ref      : (1, bh)       f32
    w2_ref      : (bh, bn)      bf16
    b2_ref      : (1, bn)       f32
    o_ref       : (bm, bn)      f32
    acc_ref     : (bm, bn)      f32  scratch, resident across the k axis
    h_cache_ref : (K, bm, bh)   bf16 scratch, hidden activations cached
                                     across the j (d_out) axis
    """
    j = pl.program_id(1)
    k = pl.program_id(2)

    @pl.when(k == 0)
    def _init():
        acc_ref[...] = jnp.zeros_like(acc_ref)

    # Layer 1 (x @ W1[:, k-tile] + b1, ReLU) runs only on the first d_out
    # tile; later j tiles read the cached bf16 activations instead of
    # recomputing them (and their W1 tile is never fetched — see w1_map).
    @pl.when(j == 0)
    def _layer1():
        h = jnp.dot(x_ref[...].astype(jnp.bfloat16), w1_ref[...],
                    preferred_element_type=jnp.float32)
        h = jnp.maximum(h + b1_ref[...], 0.0)
        h_cache_ref[k] = h.astype(h_cache_ref.dtype)

    # Layer 2: contract this hidden tile into the f32 accumulator.
    acc_ref[...] += jnp.dot(h_cache_ref[k], w2_ref[...],
                            preferred_element_type=jnp.float32)

    @pl.when(k == pl.num_programs(2) - 1)
    def _finalize():
        o_ref[...] = (acc_ref[...] + b2_ref[...]).astype(o_ref.dtype)


# ----------------------------------------------------------------------------
# Helpers
# ----------------------------------------------------------------------------
def _vmem_capacity_bytes():
    """Physical VMEM of the current device; 64 MiB (v7x) floor if unknown."""
    try:
        cap = getattr(pltpu.get_tpu_info(), "vmem_capacity_bytes", None)
        if cap:
            return int(cap)
    except Exception:
        pass
    return 64 * 1024 * 1024


def _fit_tile(dim, preferred, min_tile=128):
    """Largest tile <= preferred that divides dim (halving down to min_tile)."""
    t = min(preferred, dim)
    while t > min_tile and dim % t != 0:
        t //= 2
    return t


def _vmem_footprint(bm, bn, bh, d_in, h, out_bytes):
    """Double-buffered input/output tiles + persistent scratch, in bytes."""
    return (2 * (bm * d_in * 4          # x tile (f32)
                 + d_in * bh * 2        # W1 tile (bf16)
                 + bh * 4               # b1 tile (f32)
                 + bh * bn * 2          # W2 tile (bf16)
                 + bn * 4               # b2 tile (f32)
                 + bm * bn * out_bytes)  # output tile
            + bm * bn * 4               # f32 accumulator scratch
            + bm * h * 2)               # cached hidden activations (bf16)


# ----------------------------------------------------------------------------
# Wrapper
# ----------------------------------------------------------------------------
def fused_mlp(x, w1, b1, w2, b2, *, batch_tile=256, dout_tile=256,
              hidden_tile=256, out_dtype=jnp.float32):
    """relu(x @ w1 + b1) @ w2 + b2, fused on TPU.

    Falls back to plain jnp (XLA fusion) when shapes are too small, not
    tile-aligned, or would overflow the device VMEM budget.
    """
    B, D_in = x.shape
    H = w1.shape[1]
    D_out = w2.shape[1]

    # Parameters are expected to be pre-cast in _build_module; astype is a
    # no-op in that case (no extra HBM pass per call).
    w1 = w1.astype(jnp.bfloat16)
    w2 = w2.astype(jnp.bfloat16)
    b1 = b1.reshape(1, H).astype(jnp.float32)
    b2 = b2.reshape(1, D_out).astype(jnp.float32)

    bm = _fit_tile(B, batch_tile)
    bn = _fit_tile(D_out, dout_tile)
    bh = _fit_tile(H, hidden_tile)

    # Only the batch axis is 'parallel' (the d_out axis carries the hidden
    # cache dependency), so prefer >=2 batch blocks for v7x's two TensorCores.
    if bm > 128 and B // bm < 2 and B % (bm // 2) == 0:
        bm //= 2

    out_bytes = jnp.dtype(out_dtype).itemsize
    vmem_cap = _vmem_capacity_bytes()
    budget = int(vmem_cap * 0.75)          # leave headroom for the compiler

    # Shrink tiles until the footprint fits the (device-aware) VMEM budget.
    while (_vmem_footprint(bm, bn, bh, D_in, H, out_bytes) > budget
           and bh > 128 and H % (bh // 2) == 0):
        bh //= 2
    while (_vmem_footprint(bm, bn, bh, D_in, H, out_bytes) > budget
           and bm > 128 and B % (bm // 2) == 0):
        bm //= 2
    while (_vmem_footprint(bm, bn, bh, D_in, H, out_bytes) > budget
           and bn > 128 and D_out % (bn // 2) == 0):
        bn //= 2
    footprint = _vmem_footprint(bm, bn, bh, D_in, H, out_bytes)

    kernel_friendly = (
        B >= 128 and D_in >= 128 and H >= 128 and D_out >= 128
        and B % bm == 0 and D_out % bn == 0 and H % bh == 0
        and bm % 16 == 0 and bn % 128 == 0 and bh % 128 == 0
        and D_in % 128 == 0
        and footprint <= budget
    )

    if not kernel_friendly:
        # Tiny / ragged shapes (or VMEM-overflowing configs): launch + DMA
        # overhead dwarfs compute — let XLA fuse it with the same numerics.
        xb = x.astype(jnp.bfloat16)
        h = jnp.maximum(
            jnp.dot(xb, w1, preferred_element_type=jnp.float32) + b1, 0.0)
        y = jnp.dot(h.astype(jnp.bfloat16), w2,
                    preferred_element_type=jnp.float32) + b2
        return y.astype(out_dtype)

    grid = (B // bm, D_out // bn, H // bh)   # reduction (H) axis last
    num_i = grid[0]

    vmem_limit = int(min(vmem_cap, max(2 * footprint, 16 * 1024 * 1024)))

    cost = pl.CostEstimate(
        flops=2 * B * (D_in * H + H * D_out),
        transcendentals=0,
        # x streamed once; weights/biases re-streamed once per batch block;
        # output written once (layer-1 is no longer recomputed per j tile).
        bytes_accessed=(B * D_in * 4
                        + num_i * (D_in * H * 2 + H * 4
                                   + H * D_out * 2 + D_out * 4)
                        + B * D_out * out_bytes),
    )

    # W1/b1 are only consumed while j == 0; clamping their block index for
    # j > 0 lets the pipeline skip the (unused) refetch on later d_out tiles.
    def w1_map(i, j, k):
        return (0, jnp.where(j == 0, k, 0))

    def b1_map(i, j, k):
        return (0, jnp.where(j == 0, k, 0))

    return pl.pallas_call(
        _fused_mlp_kernel,
        out_shape=jax.ShapeDtypeStruct((B, D_out), out_dtype),
        grid_spec=pltpu.PrefetchScalarGridSpec(
            num_scalar_prefetch=0,
            grid=grid,
            in_specs=[
                pl.BlockSpec((bm, D_in), lambda i, j, k: (i, 0)),   # x
                pl.BlockSpec((D_in, bh), w1_map),                   # W1
                pl.BlockSpec((1, bh), b1_map),                      # b1
                pl.BlockSpec((bh, bn), lambda i, j, k: (k, j)),     # W2
                pl.BlockSpec((1, bn), lambda i, j, k: (0, j)),      # b2
            ],
            out_specs=pl.BlockSpec((bm, bn), lambda i, j, k: (i, j)),
            scratch_shapes=[
                pltpu.VMEM((bm, bn), jnp.float32),             # accumulator
                pltpu.VMEM((H // bh, bm, bh), jnp.bfloat16),   # hidden cache
            ],
        ),
        compiler_params=pltpu.CompilerParams(
            # j (d_out) carries the hidden-cache dependency and k carries the
            # accumulator, so only the batch axis is safe to shard (v7x).
            dimension_semantics=("parallel", "arbitrary", "arbitrary"),
            vmem_limit_bytes=vmem_limit,
        ),
        cost_estimate=cost,
    )(x, w1, b1, w2, b2)


# ----------------------------------------------------------------------------
# Concrete realization of BaseModule
# ----------------------------------------------------------------------------
class BaseModulePallas:
    """Concrete BaseModule: __init__ builds the module from model_cfg,
    forward() delegates to _forward() which runs the fused Pallas kernel."""

    def __init__(self, rank, model_cfg, sequential_wrapper_cfg):
        self.rank = rank
        self.model_cfg = model_cfg
        self.sequential_wrapper_cfg = sequential_wrapper_cfg
        self.module = self._build_module()

    def _build_module(self):
        # Deterministic parameter init (synthetic; no checkpoint load).
        d_in = self.model_cfg["in_features"]
        d_hidden = self.model_cfg["hidden_features"]
        d_out = self.model_cfg["out_features"]
        key = jax.random.PRNGKey(0)
        k1, k2, k3, k4 = jax.random.split(key, 4)
        s1 = 1.0 / jnp.sqrt(d_in)
        s2 = 1.0 / jnp.sqrt(d_hidden)
        # Weights are cast to bf16 ONCE here (MXU input dtype) rather than
        # per forward call; biases stay f32 for the epilogue adds.
        return {
            "w1": jax.random.uniform(k1, (d_in, d_hidden), jnp.float32,
                                     -s1, s1).astype(jnp.bfloat16),
            "b1": jax.random.uniform(k2, (1, d_hidden), jnp.float32, -s1, s1),
            "w2": jax.random.uniform(k3, (d_hidden, d_out), jnp.float32,
                                     -s2, s2).astype(jnp.bfloat16),
            "b2": jax.random.uniform(k4, (1, d_out), jnp.float32, -s2, s2),
        }

    def _forward(self, x):
        p = self.module
        return fused_mlp(x, p["w1"], p["b1"], p["w2"], p["b2"])

    def forward(self, *args, **kwargs):
        output = self._forward(*args, **kwargs)
        return output

    def get_state_dict(self):
        return [self.module]

    def load_weights(self, state_dict):
        self.module = state_dict[0]

    # TODO(synk): parameter_rrefs() has no Pallas/JAX equivalent (RPC RRefs).


# ----------------------------------------------------------------------------
# Demo / correctness check
# ----------------------------------------------------------------------------
if __name__ == "__main__":
    # Small but tile-aligned shapes so the Pallas path actually executes and
    # every structural feature is exercised: 2 batch blocks (megacore axis),
    # 2 d_out blocks (hidden-cache reuse), 2 hidden blocks (accumulation).
    model_cfg = {"in_features": 128, "hidden_features": 512,
                 "out_features": 512}
    mod = BaseModulePallas(rank=0, model_cfg=model_cfg,
                           sequential_wrapper_cfg={})

    key = jax.random.PRNGKey(0)
    x = jax.random.normal(key, (512, 128), dtype=jnp.float32)

    out = mod.forward(x)
    out = jax.block_until_ready(out)

    # Pure-JAX reference with the same bf16-matmul / f32-accumulate numerics.
    p = mod.module
    xb = x.astype(jnp.bfloat16)
    h_ref = jnp.maximum(
        jnp.dot(xb, p["w1"], preferred_element_type=jnp.float32) + p["b1"],
        0.0)
    ref = jnp.dot(h_ref.astype(jnp.bfloat16), p["w2"],
                  preferred_element_type=jnp.float32) + p["b2"]
    ref = ref.astype(jnp.float32)

    assert out.shape == (512, 512)
    assert out.dtype == jnp.float32
    assert jnp.allclose(out, ref, atol=2e-2, rtol=2e-2)

    print("KERNEL_OK")
</pallas_src>

<mosaic_0001>
module attributes {stable_mosaic.version = 11 : i64} {
  func.func @_fused_mlp_kernel(%arg0: i32, %arg1: i32, %arg2: i32, %arg3: memref<256x128xf32, #tpu.memory_space<vmem>>, %arg4: memref<128x256xbf16, #tpu.memory_space<vmem>>, %arg5: memref<1x256xf32, #tpu.memory_space<vmem>>, %arg6: memref<256x256xbf16, #tpu.memory_space<vmem>>, %arg7: memref<1x256xf32, #tpu.memory_space<vmem>>, %arg8: memref<256x256xf32, #tpu.memory_space<vmem>>, %arg9: memref<256x256xf32, #tpu.memory_space<vmem>>, %arg10: memref<2x256x256xbf16, #tpu.memory_space<vmem>>) attributes {dimension_semantics = [#tpu.dimension_semantics<parallel>, #tpu.dimension_semantics<arbitrary>, #tpu.dimension_semantics<arbitrary>], iteration_bounds = array<i64: 2, 2, 2>, scalar_prefetch = 0 : i64, scratch_operands = 2 : i64, tpu.core_type = #tpu.core_type<tc>, window_params = [{transform_indices = @transform_0, window_bounds = array<i64: 256, 128>}, {transform_indices = @transform_1, window_bounds = array<i64: 128, 256>}, {transform_indices = @transform_2, window_bounds = array<i64: 1, 256>}, {transform_indices = @transform_3, window_bounds = array<i64: 256, 256>}, {transform_indices = @transform_4, window_bounds = array<i64: 1, 256>}, {transform_indices = @transform_5, window_bounds = array<i64: 256, 256>}]} {
    %c0_i32 = arith.constant 0 : i32
    %0 = arith.cmpi eq, %arg2, %c0_i32 : i32
    %1 = arith.extui %0 : i1 to i32
    %c0_i32_0 = arith.constant 0 : i32
    %2 = arith.cmpi ne, %1, %c0_i32_0 : i32
    scf.if %2 {
      %cst_11 = arith.constant 0.000000e+00 : f32
      %17 = vector.broadcast %cst_11 : f32 to vector<256x256xf32>
      %c0_12 = arith.constant 0 : index
      %c0_13 = arith.constant 0 : index
      %18 = vector.load %arg9[%c0_12, %c0_13] : memref<256x256xf32, #tpu.memory_space<vmem>>, vector<256x256xf32>
      tpu.vector_store %arg9[%c0_12, %c0_13], %17 {strides = array<i32>} : memref<256x256xf32, #tpu.memory_space<vmem>>, vector<256x256xf32>,
    } else {
    }
    %c0_i32_1 = arith.constant 0 : i32
    %3 = arith.cmpi eq, %arg1, %c0_i32_1 : i32
    %4 = arith.extui %3 : i1 to i32
    %c0_i32_2 = arith.constant 0 : i32
    %5 = arith.cmpi ne, %4, %c0_i32_2 : i32
    scf.if %5 {
      %c0_11 = arith.constant 0 : index
      %c0_12 = arith.constant 0 : index
      %17 = vector.load %arg3[%c0_11, %c0_12] : memref<256x128xf32, #tpu.memory_space<vmem>>, vector<256x128xf32>
      %18 = arith.truncf %17 : vector<256x128xf32> to vector<256x128xbf16>
      %c0_13 = arith.constant 0 : index
      %c0_14 = arith.constant 0 : index
      %19 = vector.load %arg4[%c0_13, %c0_14] : memref<128x256xbf16, #tpu.memory_space<vmem>>, vector<128x256xbf16>
      %cst_15 = arith.constant dense<0.000000e+00> : vector<256x256xf32>
      %20 = tpu.matmul %18, %19, %cst_15 {dimension_numbers = #tpu.dot_dimension_numbers<[1], [0], [0], [1], [0, 0, 1, 1], [], []>} : vector<256x128xbf16>, vector<128x256xbf16>, vector<256x256xf32> -> vector<256x256xf32>
      %c0_16 = arith.constant 0 : index
      %c0_17 = arith.constant 0 : index
      %21 = vector.load %arg5[%c0_16, %c0_17] : memref<1x256xf32, #tpu.memory_space<vmem>>, vector<1x256xf32>
      %22 = vector.broadcast %21 : vector<1x256xf32> to vector<256x256xf32>
      %23 = arith.addf %20, %22 : vector<256x256xf32>
      %cst_18 = arith.constant 0.000000e+00 : f32
      %24 = vector.broadcast %cst_18 : f32 to vector<256x256xf32>
      %25 = arith.maximumf %23, %24 : vector<256x256xf32>
      %26 = arith.truncf %25 : vector<256x256xf32> to vector<256x256xbf16>
      %27 = arith.index_cast %arg2 : i32 to index
      %c0_19 = arith.constant 0 : index
      %c0_20 = arith.constant 0 : index
      %28 = vector.load %arg10[%27, %c0_19, %c0_20] : memref<2x256x256xbf16, #tpu.memory_space<vmem>>, vector<1x256x256xbf16>
      %29 = vector.shape_cast %28 : vector<1x256x256xbf16> to vector<256x256xbf16>
      %30 = vector.shape_cast %26 : vector<256x256xbf16> to vector<1x256x256xbf16>
      tpu.vector_store %arg10[%27, %c0_19, %c0_20], %30 {strides = array<i32>} : memref<2x256x256xbf16, #tpu.memory_space<vmem>>, vector<1x256x256xbf16>,
    } else {
    }
    %c0 = arith.constant 0 : index
    %c0_3 = arith.constant 0 : index
    %6 = vector.load %arg9[%c0, %c0_3] : memref<256x256xf32, #tpu.memory_space<vmem>>, vector<256x256xf32>
    %7 = arith.index_cast %arg2 : i32 to index
    %c0_4 = arith.constant 0 : index
    %c0_5 = arith.constant 0 : index
    %8 = vector.load %arg10[%7, %c0_4, %c0_5] : memref<2x256x256xbf16, #tpu.memory_space<vmem>>, vector<1x256x256xbf16>
    %9 = vector.shape_cast %8 : vector<1x256x256xbf16> to vector<256x256xbf16>
    %c0_6 = arith.constant 0 : index
    %c0_7 = arith.constant 0 : index
    %10 = vector.load %arg6[%c0_6, %c0_7] : memref<256x256xbf16, #tpu.memory_space<vmem>>, vector<256x256xbf16>
    %cst = arith.constant dense<0.000000e+00> : vector<256x256xf32>
    %11 = tpu.matmul %9, %10, %cst {dimension_numbers = #tpu.dot_dimension_numbers<[1], [0], [0], [1], [0, 0, 1, 1], [], []>} : vector<256x256xbf16>, vector<256x256xbf16>, vector<256x256xf32> -> vector<256x256xf32>
    %12 = arith.addf %6, %11 : vector<256x256xf32>
    %c0_8 = arith.constant 0 : index
    %c0_9 = arith.constant 0 : index
    %13 = vector.load %arg9[%c0_8, %c0_9] : memref<256x256xf32, #tpu.memory_space<vmem>>, vector<256x256xf32>
    tpu.vector_store %arg9[%c0_8, %c0_9], %12 {strides = array<i32>} : memref<256x256xf32, #tpu.memory_space<vmem>>, vector<256x256xf32>,
    %c1_i32 = arith.constant 1 : i32
    %14 = arith.cmpi eq, %arg2, %c1_i32 : i32
    %15 = arith.extui %14 : i1 to i32
    %c0_i32_10 = arith.constant 0 : i32
    %16 = arith.cmpi ne, %15, %c0_i32_10 : i32
    scf.if %16 {
      %c0_11 = arith.constant 0 : index
      %c0_12 = arith.constant 0 : index
      %17 = vector.load %arg9[%c0_11, %c0_12] : memref<256x256xf32, #tpu.memory_space<vmem>>, vector<256x256xf32>
      %c0_13 = arith.constant 0 : index
      %c0_14 = arith.constant 0 : index
      %18 = vector.load %arg7[%c0_13, %c0_14] : memref<1x256xf32, #tpu.memory_space<vmem>>, vector<1x256xf32>
      %19 = vector.broadcast %18 : vector<1x256xf32> to vector<256x256xf32>
      %20 = arith.addf %17, %19 : vector<256x256xf32>
      %c0_15 = arith.constant 0 : index
      %c0_16 = arith.constant 0 : index
      %21 = vector.load %arg8[%c0_15, %c0_16] : memref<256x256xf32, #tpu.memory_space<vmem>>, vector<256x256xf32>
      tpu.vector_store %arg8[%c0_15, %c0_16], %20 {strides = array<i32>} : memref<256x256xf32, #tpu.memory_space<vmem>>, vector<256x256xf32>,
    } else {
    }
    return
  }
  func.func @transform_0(%arg0: i32, %arg1: i32, %arg2: i32) -> (i32, i32) {
    %c0_i32 = arith.constant 0 : i32
    %c0_i32_0 = arith.constant 0 : i32
    return %arg0, %c0_i32 : i32, i32
  }
  func.func @transform_1(%arg0: i32, %arg1: i32, %arg2: i32) -> (i32, i32) {
    %c0_i32 = arith.constant 0 : i32
    %0 = arith.cmpi eq, %arg1, %c0_i32 : i32
    %c0_i32_0 = arith.constant 0 : i32
    %1 = arith.select %0, %arg2, %c0_i32_0 : i32
    %c0_i32_1 = arith.constant 0 : i32
    %c0_i32_2 = arith.constant 0 : i32
    return %c0_i32_1, %1 : i32, i32
  }
  func.func @transform_2(%arg0: i32, %arg1: i32, %arg2: i32) -> (i32, i32) {
    %c0_i32 = arith.constant 0 : i32
    %0 = arith.cmpi eq, %arg1, %c0_i32 : i32
    %c0_i32_0 = arith.constant 0 : i32
    %1 = arith.select %0, %arg2, %c0_i32_0 : i32
    %c0_i32_1 = arith.constant 0 : i32
    %c0_i32_2 = arith.constant 0 : i32
    return %c0_i32_1, %1 : i32, i32
  }
  func.func @transform_3(%arg0: i32, %arg1: i32, %arg2: i32) -> (i32, i32) {
    %c0_i32 = arith.constant 0 : i32
    return %arg2, %arg1 : i32, i32
  }
  func.func @transform_4(%arg0: i32, %arg1: i32, %arg2: i32) -> (i32, i32) {
    %c0_i32 = arith.constant 0 : i32
    %c0_i32_0 = arith.constant 0 : i32
    return %c0_i32, %arg1 : i32, i32
  }
  func.func @transform_5(%arg0: i32, %arg1: i32, %arg2: i32) -> (i32, i32) {
    %c0_i32 = arith.constant 0 : i32
    return %arg0, %arg1 : i32, i32
  }
}

</mosaic_0001>

<bundles_post_ra>
// kernel: tpu_custom_call.1
= control target key start
LH: loop header
LB: loop body
LE: loop exit
PB: predicated region body
PF: predicated region fallthrough
CT: control target
= control target key end

     0   :  { %s3641_s0 = inlined_call_operand.hbm [shape: f32[512,128], index: 0, kind: input, shape index: {}]   ;;  %s3642_s1 = inlined_call_operand.hbm [shape: bf16[128,512], index: 1, kind: input, shape index: {}]   ;;  %s3643_s2 = inlined_call_operand.vmem [shape: f32[1,512], index: 2, kind: input, shape index: {}]   ;;  %s3644_s3 = inlined_call_operand.hbm [shape: bf16[512,512], index: 3, kind: input, shape index: {}]   ;;  %s3645_s4 = inlined_call_operand.vmem [shape: f32[1,512], index: 4, kind: input, shape index: {}]   ;;  %s3646_s5 = inlined_call_operand.hbm [shape: f32[512,512], index: 5, kind: output, shape index: {}]  }
   0x1   :  { %3680 = sst [smem:[#allocation35_spill]] %s3641_s0 }
   0x2   :  { %3681 = sst [smem:[#allocation36_spill]] %s3642_s1 }
   0x3   :  { %3682 = sst [smem:[#allocation37_spill]] %s3643_s2 }
   0x4   :  { %3683 = sst [smem:[#allocation38_spill]] %s3644_s3 }
   0x5   :  { %3684 = sst [smem:[#allocation39_spill]] %s3645_s4 }
   0x6   :  { %3685 = sst [smem:[#allocation40_spill]] %s3646_s5 }
   0x7   :  { %10 = vsyncpa [#allocation5], 0 }
   0x8   :  { %12 = vsyncpa [#allocation5 + $0x1], 0 }
   0x9   :  { %13 = vsyncpa [#allocation8], 0 }
   0xa   :  { %15 = vsyncpa [#allocation8 + $0x1], 0 }
   0xb   :  { %16 = vsyncpa [#allocation6], 0 }
   0xc   :  { %18 = vsyncpa [#allocation6 + $0x1], 0  ;;  %s2685_s18 = smov 0   ;;  %s2687_s19 = smov 0  }
   0xd   :  { %s2689_s20 = smov 0   ;;  %s2691_s21 = smov 0  }
   0xe   :  { %s2693_s22 = smov 0   ;;  %s2695_s23 = smov 0  }
   0xf   :  { %s2697_s24 = smov 0   ;;  %s2699_s25 = smov 0  }
  0x10   :  { %s2701_s26 = smov 0   ;;  %s2703_s27 = smov 0  }
  0x11   :  { %s2705_s28 = smov 0   ;;  %s2707_s29 = smov 0  }
  0x12   :  { %s2709_s30 = smov 0   ;;  %s2711_s6 = smov 0  }
  0x13   :  { %s2713_s7 = smov 0   ;;  %s2715_s8 = smov 0  }
  0x14   :  { %s2717_s9 = smov 0   ;;  %s2719_s10 = smov 0  }
  0x15   :  { %s2721_s11 = smov 0  }
  0x16 LB: > { %3686 = sst [smem:[#allocation15_spill]] %s2569_s18  ;;  %s2781_s12 = sadd.s32 4294967295, %s2641_s11   ;;  %s2641_s11 = sphi %s2721_s11, %s24_s11   ;;  %s2637_s10 = sphi %s2719_s10, %s3773_s10   ;;  %s2633_s9 = sphi %s2717_s9, %s3783_s9   ;;  %s2629_s8 = sphi %s2715_s8, %s3782_s8   ;;  %s2625_s7 = sphi %s2713_s7, %s3768_s7   ;;  %s2621_s6 = sphi %s2711_s6, %s3781_s6   ;;  %s2617_s30 = sphi %s2709_s30, %s3780_s30   ;;  %s2613_s29 = sphi %s2707_s29, %s3767_s29   ;;  %s2609_s28 = sphi %s2705_s28, %s3779_s28   ;;  %s2605_s27 = sphi %s2703_s27, %s3778_s27   ;;  %s2601_s26 = sphi %s2701_s26, %s3765_s26   ;;  %s2597_s25 = sphi %s2699_s25, %s3777_s25   ;;  %s2593_s24 = sphi %s2697_s24, %s3776_s24   ;;  %s2589_s23 = sphi %s2695_s23, %s3775_s23   ;;  %s2585_s22 = sphi %s2693_s22, %s3762_s22   ;;  %s2581_s21 = sphi %s2691_s21, %s3761_s21   ;;  %s2577_s20 = sphi %s2689_s20, %s3760_s20   ;;  %s2573_s19 = sphi %s2687_s19, %s3772_s19   ;;  %s2569_s18 = sphi %s2685_s18, %s3770_s18  }
  0x17   : > { %3687 = sst [smem:[#allocation16_spill]] %s2577_s20  ;;  %s36_s13 = sadd.s32 1, %s2629_s8 }
  0x18   : > { %3688 = sst [smem:[#allocation17_spill]] %s2581_s21  ;;  %p37_p0 = scmp.ge.s32.totalorder %s36_s13, 2 }
  0x19   : > { %3689 = sst [smem:[#allocation18_spill]] %s2585_s22  ;;  %s39_s14 = sadd.s32 1, %s2633_s9 }
  0x1a   : > { %3690 = sst [smem:[#allocation19_spill]] %s2589_s23  ;;  %p3657_p1 = scmp.eq.s32.totalorder %s2641_s11, 0 }
  0x1b   : > { %3691 = sst [smem:[#allocation20_spill]] %s2601_s26  ;;  %p3656_p2 = scmp.eq.s32.totalorder %s2781_s12, 0 }
  0x1c   : > { %3692 = sst [smem:[#allocation21_spill]] %s2613_s29  ;;  %s3785_s13 = smov (%p37_p0, %s36_s13), 0 }
  0x1d   : > { %3693 = sst [smem:[#allocation22_spill]] %s2617_s30  ;;  %s3787_s14 = smov (!%p37_p0, %s39_s14), %s2633_s9 }
  0x1e   : > { %3694 = sst [smem:[#allocation23_spill]] %s2621_s6  ;;  %p73_p3 = scmp.eq.s32.totalorder %s2633_s9, 0 }
  0x1f   : > { %3695 = sst [smem:[#allocation24_spill]] %s2625_s7  ;;  %s80_s15 = sadd.s32 1, %s2601_s26 }
  0x20   : > { %3696 = sst [smem:[#allocation25_spill]] %s2637_s10  ;;  %p3658_p4 = scmp.ge.s32.totalorder %s3787_s14, 2 }
  0x21   : > { %3697 = sst [smem:[#allocation26_spill]] %s3785_s13  ;;  %p87_p5 = scmp.ne.s32.totalorder %s2601_s26, %s2597_s25 }
  0x22   : > { %s74_s16 = scalar_select %p73_p3, %s2629_s8, 0 }
  0x23   : > { %s2801_s17 = scalar_select %p3658_p4, 0, %s3787_s14  }
  0x24   : > { %p2805_p6 = por %p87_p5, %p3657_p1  ;;  %p93_p7 = scmp.ne.s32.totalorder %s2597_s25, %s2593_s24 }
  0x25   : > { %3698 = sst [smem:[#allocation27_spill]] %s2801_s17  ;;  %p75_p8 = scmp.eq.s32.totalorder %s2801_s17, 0 }
  0x26   : > { %p2814_p9 = por %p93_p7, %p3656_p2  ;;  %p3655_p10 = scmp.lt.s32.totalorder %s2641_s11, 8 }
  0x27   : > { %s76_s2 = scalar_select %p75_p8, %s3785_s13, 0 }
  0x28   : > { %s3700_s7 = scalar_select %p2814_p9, 1, 0 }
  0x29   : > { %s77_s4 = ssub.s32 %s74_s16, %s76_s2  ;;  %s250_s30 = sand.u32 1, %s2641_s11  }
  0x2a   : > { %p78_p11 = scmp.eq.s32.totalorder %s77_s4, 0  ;;  %s252_s6 = sand.u32 1, %s2601_s26  }
  0x2b   : > { %s2048_s3 = sshll.u32 %s74_s16, 7  ;;  %s1970_s22 = sshll.u32 %s252_s6, 7 }
  0x2c   : > { %s2823_s21 = scalar_select %p78_p11, %s2601_s26, %s80_s15  }
  0x2d   : > { %s3702_s1 = sld [smem:[#allocation36_spill]]  ;;  %p2834_p12 = pnand %p3655_p10, %p2805_p6 }
  0x2e   : > { %3701 = sst [smem:[#allocation28_spill]] %s2823_s21  ;;  %s254_s4 = scalar_lea.vmem [#allocation7], %s1970_s22 }
  0x2f   : > { %s263_s15 = sshll.u32 %s254_s4, 4  ;;  %s2840_s6 = scalar_lea.sflag [#allocation8], %s250_s30  ;;  %s2838_s15 = int_to_ptr.vmem [resolvable:$true] %s263_s15 }
  0x30   : > { %p2359_p0 = pneg %p2834_p12 }
  0x33   : > { %s2828_s24 = scalar_lea.hbm %s3702_s1, %s2048_s3  ;;  %s2362_s23 = scalar_lea.hbm %s3702_s1, 4096 }
  0x34   : > { %s2357_s0 = scalar_lea.hbm %s2828_s24, 2048  ;;  %p2363_p6 = scmp.lt.u32.totalorder %s2828_s24, %s3702_s1 }
  0x35   : > { %p2358_p13 = scmp.ne.s32.totalorder %s2828_s24, %s2357_s0  ;;  %p2364_p7 = scmp.lt.u32.totalorder %s2362_s23, %s2357_s0 }
  0x36   : > { %p2366_p11 = scmp.lt.u32.totalorder %s2357_s0, %s2828_s24 }
  0x37   : > { %p2360_p3 = pnand %p2359_p0, %p2358_p13  ;;  %p2365_p8 = por %p2364_p7, %p2363_p6 }
  0x39   : > { %p2361_p5 = pneg %p2360_p3  ;;  %p2367_p10 = por %p2366_p11, %p2365_p8 }
  0x3b   : > { %p2368_p2 = pnand %p2367_p10, %p2361_p5 }
  0x3d   : > { %2371 = shalt.err (!%p2368_p2)
}
  0x3e   : > { %s2372_s22 = scalar_lea.vmem %s2838_s15, 2048  ;;  %s2643_s30 = smov [#allocation7]  }
  0x3f   : > { %p2373_p13 = scmp.ne.s32.totalorder %s2838_s15, %s2372_s22  ;;  %s2377_s4 = sshll.u32 %s2643_s30, 4  ;;  %s2378_s4 = int_to_ptr.vmem [resolvable:$false] %s2377_s4 }
  0x40   : > { %s2379_s21 = scalar_lea.vmem %s2378_s4, 4096  ;;  %p2380_p4 = scmp.lt.s32.totalorder %s2838_s15, %s2378_s4 }
  0x41   : > { %p2375_p3 = pnand %p2373_p13, %p2359_p0  ;;  %p2381_p6 = scmp.lt.s32.totalorder %s2379_s21, %s2372_s22 }
  0x43   : > { %p2376_p1 = pneg %p2375_p3  ;;  %p2382_p7 = por %p2381_p6, %p2380_p4 }
  0x45   : > { %p2383_p8 = pnand %p2382_p7, %p2376_p1 }
  0x47   : > { %2386 = shalt.err (!%p2383_p8)
}
  0x48   : > { %s3659_s0 = smov 256   ;;  %s3660_s3 = smov 128  }
  0x49   : > { %s3662_s5 = smov 8   ;;  %p1978_p1 = scmp.ge.s32.totalorder %s2641_s11, 1 }
  0x4a   : > { %2115 = dma.hbm_to_vmem [thread:$0]  (!%p2834_p12), %s2828_s24, 2048, %s2838_s15, %s2840_s6, %s3659_s0, %s3660_s3, %s3662_s5  }
  0x4b   : > { %p315_p2 = scmp.lt.s32.totalorder %s2641_s11, 9  ;;  %s1964_s16 = sadd.s32 4294967294, %s2641_s11  }
  0x4c   : > { %s43_s22 = sadd.s32 1, %s2637_s10  ;;  %s50_s30 = sadd.s32 1, %s2613_s29 }
  0x4d   : > { %p2873_p4 = pnand %p1978_p1, %p315_p2  ;;  %p3705_p10 = scmp.ge.s32.totalorder %s3787_s14, 2 }
  0x4e   : > { %p57_p0 = scmp.ne.s32.totalorder %s2613_s29, %s2609_s28  ;;  %p63_p5 = scmp.ne.s32.totalorder %s2609_s28, %s2605_s27 }
  0x4f   : > { %s3789_s22 = smov (!%p3705_p10, %s43_s22), %s2637_s10  ;;  %s133_s24 = ssub.s32 %s2629_s8, %s3785_s13 }
  0x50   : > { %p45_p12 = scmp.ge.s32.totalorder %s3789_s22, 2  ;;  %p3706_p11 = scmp.eq.s32.totalorder %s2641_s11, 0 }
  0x51   : > { %p3708_p3 = scmp.eq.s32.totalorder %s2781_s12, 0  ;;  %s134_s27 = ssub.s32 %s2633_s9, %s2801_s17 }
  0x52   : > { %p2891_p13 = por %p3706_p11, %p57_p0  ;;  %s3791_s22 = smov (%p45_p12, %s3789_s22), 0 }
  0x53   : > { %p2897_p6 = por %p3708_p3, %p63_p5  ;;  %3710 = sst [smem:[#allocation29_spill]] %s3791_s22 }
  0x54   : > { %s192_s15 = sadd.s32 1, %s2577_s20  ;;  %s47_s4 = ssub.s32 %s2637_s10, %s3791_s22 }
  0x55   : > { %s3709_s14 = scalar_select %p2897_p6, 1, 0 }
  0x56   : > { %s2908_s21 = sor.u32 %s134_s27, %s133_s24  ;;  %p48_p7 = scmp.eq.s32.totalorder %s47_s4, 0 }
  0x57   : > { %s189_s0 = sor.u32 %s134_s27, %s47_s4  ;;  %p202_p1 = scmp.ne.s32.totalorder %s2577_s20, %s2573_s19 }
  0x58   : > { %s2914_s3 = scalar_select %p48_p7, %s2613_s29, %s50_s30  }
  0x59   : > { %p190_p2 = scmp.eq.s32.totalorder %s189_s0, 0  ;;  %p203_p10 = scmp.eq.s32.totalorder %s2781_s12, 7 }
  0x5a   : > { %3711 = sst [smem:[#allocation30_spill]] %s2914_s3  ;;  %p208_p0 = scmp.ne.s32.totalorder %s2573_s19, %s2569_s18 }
  0x5b   : > { %p209_p5 = scmp.eq.s32.totalorder %s1964_s16, 7  ;;  %p2922_p12 = por %p203_p10, %p202_p1 }
  0x5c   : > { %s2920_s5 = scalar_select %p190_p2, %s2577_s20, %s192_s15  }
  0x5d   : > { %s3713_s1 = scalar_select %p2922_p12, 1, 0 }
  0x5e   : > { %3712 = sst [smem:[#allocation31_spill]] %s2920_s5  ;;  %p2926_p11 = por %p209_p5, %p208_p0 }
  0x5f   : > { %3714 = sst [smem:[#allocation32_spill]] %s3713_s1  ;;  %s229_s27 = sand.u32 1, %s2613_s29  }
  0x60   : > { %s3715_s24 = scalar_select %p2926_p11, 1, 0 }
  0x61   : > { %s2047_s4 = sshll.u32 %s2637_s10, 12  ;;  %s1967_s22 = sshll.u32 %s229_s27, 8 }
  0x62   : > { %3716 = sst [smem:[#allocation33_spill]] %s3715_s24  ;;  %s3717_s13 = sld [smem:[#allocation35_spill]] }
  0x63   : > { %s233_s16 = scalar_lea.vmem [#allocation4], %s1967_s22  ;;  %p3718_p3 = scmp.lt.s32.totalorder %s2641_s11, 8 }
  0x64   : > { %s240_s15 = sshll.u32 %s233_s16, 4  ;;  %s2947_s10 = scalar_lea.sflag [#allocation5], %s229_s27  ;;  %s2945_s15 = int_to_ptr.vmem [resolvable:$true] %s240_s15 }
  0x65   : > { %p2941_p7 = pnand %p3718_p3, %p2891_p13 }
  0x67   : > { %p2389_p2 = pneg %p2941_p7 }
  0x68   : > { %s2935_s0 = scalar_lea.hbm %s3717_s13, %s2047_s4  ;;  %s2392_s4 = scalar_lea.hbm %s3717_s13, 8192 }
  0x69   : > { %s2387_s17 = scalar_lea.hbm %s2935_s0, 4096  ;;  %p2393_p13 = scmp.lt.u32.totalorder %s2935_s0, %s3717_s13 }
  0x6a   : > { %p2388_p1 = scmp.ne.s32.totalorder %s2935_s0, %s2387_s17  ;;  %p2394_p5 = scmp.lt.u32.totalorder %s2392_s4, %s2387_s17 }
  0x6b   : > { %p2396_p8 = scmp.lt.u32.totalorder %s2387_s17, %s2935_s0 }
  0x6c   : > { %p2390_p10 = pnand %p2389_p2, %p2388_p1  ;;  %p2395_p3 = por %p2394_p5, %p2393_p13 }
  0x6e   : > { %p2391_p0 = pneg %p2390_p10  ;;  %p2397_p11 = por %p2396_p8, %p2395_p3 }
  0x70   : > { %p2398_p12 = pnand %p2397_p11, %p2391_p0 }
  0x72   : > { %2401 = shalt.err (!%p2398_p12)
}
  0x73   : > { %s2402_s27 = scalar_lea.vmem %s2945_s15, 4096  ;;  %s2647_s22 = smov [#allocation4]  }
  0x74   : > { %p2403_p1 = scmp.ne.s32.totalorder %s2945_s15, %s2402_s27  ;;  %s2407_s2 = sshll.u32 %s2647_s22, 4  ;;  %s2408_s2 = int_to_ptr.vmem [resolvable:$false] %s2407_s2 }
  0x75   : > { %s2409_s30 = scalar_lea.vmem %s2408_s2, 8192  ;;  %p2410_p6 = scmp.lt.s32.totalorder %s2945_s15, %s2408_s2 }
  0x76   : > { %p2405_p10 = pnand %p2403_p1, %p2389_p2  ;;  %p2411_p13 = scmp.lt.s32.totalorder %s2409_s30, %s2402_s27 }
  0x78   : > { %p2406_p9 = pneg %p2405_p10  ;;  %p2412_p5 = por %p2411_p13, %p2410_p6 }
  0x7a   : > { %p2413_p8 = pnand %p2412_p5, %p2406_p9 }
  0x7c   : > { %2416 = shalt.err (!%p2413_p8)
}
  0x7d   : > { %s3720_s17 = smov 8   ;;  %s3721_s4 = smov 128  }
  0x7e   : > { %s3722_s16 = sld [smem:[#allocation19_spill]]  ;;  %s3723_s13 = sld [smem:[#allocation18_spill]] }
  0x7f   : > { %s3724_s22 = sld [smem:[#allocation17_spill]]  ;;  %p3725_p6 = scmp.eq.s32.totalorder %s2908_s21, 0 }
  0x80   : > { %2112 = dma.hbm_to_vmem [thread:$0]  (!%p2941_p7), %s2935_s0, 4096, %s2945_s15, %s2947_s10, %s3721_s4, %s3721_s4, %s3720_s17  }
  0x81   : > { %p3727_p12 = scmp.eq.s32.totalorder %s2641_s11, 0  ;;  %s1975_s29 = sshll.u32 %s2633_s9, 1 }
  0x82   : > { %p3729_p0 = scmp.eq.s32.totalorder %s2781_s12, 0  ;;  %s2049_s0 = sshll.u32 %s2629_s8, 7 }
  0x83   : > { %s296_s15 = sadd.s32 %s2049_s0, %s1975_s29  ;;  %s3731_s24 = sld [smem:[#allocation38_spill]] }
  0x84   : > { %s138_s3 = sadd.s32 1, %s3722_s16  ;;  %p145_p9 = scmp.ne.s32.totalorder %s3722_s16, %s3723_s13 }
  0x85   : > { %s2984_s27 = scalar_select %p3725_p6, %s3722_s16, %s138_s3  }
  0x86   : > { %p2988_p11 = por %p145_p9, %p3727_p12  ;;  %p151_p2 = scmp.ne.s32.totalorder %s3723_s13, %s3724_s22 }
  0x87   : > { %3726 = sst [smem:[#allocation34_spill]] %s2984_s27  ;;  %s287_s30 = sand.u32 1, %s3722_s16  }
  0x88   : > { %p2998_p3 = por %p151_p2, %p3729_p0  ;;  %s1973_s10 = sshll.u32 %s287_s30, 8 }
  0x89   : > { %s289_s21 = scalar_lea.vmem [#allocation9], %s1973_s10  ;;  %s1977_s27 = sshll.u32 %s296_s15, 6 }
  0x8a   : > { %s3730_s26 = scalar_select %p2998_p3, 1, 0 }
  0x8b   : > { %s299_s3 = sshll.u32 %s289_s21, 4  ;;  %s3732_s1 = smov %s3731_s24  ;;  %s3003_s3 = int_to_ptr.vmem [resolvable:$true] %s299_s3 }
  0x8c   : > { %s3008_s18 = scalar_lea.hbm %s3731_s24, %s1977_s27  ;;  %p3733_p7 = scmp.lt.s32.totalorder %s2641_s11, 8 }
  0x8d   : > { %s2417_s29 = scalar_lea.hbm %s3008_s18, 4096  ;;  %s2422_s24 = scalar_lea.hbm %s3732_s1, 16384 }
  0x8e   : > { %p3014_p1 = pnand %p3733_p7, %p2988_p11  ;;  %p2418_p10 = scmp.ne.s32.totalorder %s3008_s18, %s2417_s29 }
  0x8f   : > { %p2423_p9 = scmp.lt.u32.totalorder %s3008_s18, %s3732_s1  ;;  %p2424_p6 = scmp.lt.u32.totalorder %s2422_s24, %s2417_s29 }
  0x90   : > { %p2419_p13 = pneg %p3014_p1  ;;  %p2426_p11 = scmp.lt.u32.totalorder %s2417_s29, %s3008_s18 }
  0x91   : > { %p2425_p12 = por %p2424_p6, %p2423_p9 }
  0x92   : > { %p2420_p5 = pnand %p2419_p13, %p2418_p10 }
  0x93   : > { %p2427_p2 = por %p2426_p11, %p2425_p12 }
  0x94   : > { %p2421_p8 = pneg %p2420_p5 }
  0x96   : > { %p2428_p0 = pnand %p2427_p2, %p2421_p8 }
  0x98   : > { %2431 = shalt.err (!%p2428_p0)
}
  0x99   : > { %s2432_s27 = scalar_lea.vmem %s3003_s3, 4096  ;;  %s2648_s2 = smov [#allocation9]  }
  0x9a   : > { %p2433_p7 = scmp.ne.s32.totalorder %s3003_s3, %s2432_s27  ;;  %s2437_s30 = sshll.u32 %s2648_s2, 4  ;;  %s2438_s30 = int_to_ptr.vmem [resolvable:$false] %s2437_s30 }
  0x9b   : > { %s2439_s10 = scalar_lea.vmem %s2438_s30, 8192  ;;  %p2440_p3 = scmp.lt.s32.totalorder %s3003_s3, %s2438_s30 }
  0x9c   : > { %p2435_p10 = pnand %p2433_p7, %p2419_p13  ;;  %p2441_p9 = scmp.lt.s32.totalorder %s2439_s10, %s2432_s27 }
  0x9e   : > { %p2436_p5 = pneg %p2435_p10  ;;  %p2442_p6 = por %p2441_p9, %p2440_p3 }
  0xa0   : > { %p2443_p12 = pnand %p2442_p6, %p2436_p5 }
  0xa2   : > { %2446 = shalt.err (!%p2443_p12)
}
  0xa3   : > { %s3735_s0 = smov 256   ;;  %319 = sbr.rel (%p2873_p4) target bundleno = 949 (0x3b5), region = 40 }
  0xa4   : > { %2118 = dma.hbm_to_vmem [thread:$0]  (!%p3014_p1), %s3008_s18, 4096, %s3003_s3, %s2840_s6, %s3735_s0, %s3721_s4, %s3720_s17  }
  0xa5   : > { %s321_s15 = sand.u32 (!%p2873_p4), 1, %s2609_s28   ;;  %p3736_p3 = scmp.ne.s32.totalorder (!%p2873_p4), %s3709_s14, 0 }
  0xa6   : > { %s1979_s21 = sshll.u32 (!%p2873_p4), %s321_s15, 8  ;;  %s322_s29 = scalar_lea.sflag (!%p2873_p4), [#allocation5], %s321_s15 }
  0xa7   : > { %s3050_s20 = scalar_lea.vmem (!%p2873_p4), [#allocation4], %s1979_s21 }
  0xaa   : > { %2552 = dma.done.wait (%p3736_p3), %s322_s29, 4096  }
  0xab   : > { %2554 = vsyncadd (%p3736_p3), %s322_s29, 4294963200  ;;  %s330_s13 = sand.u32 1, %s2781_s12   ;;  %s332_s18 = sand.u32 1, %s2597_s25  }
  0xac   : > { %s1980_s6 = sshll.u32 %s332_s18, 7  ;;  %s331_s23 = scalar_lea.sflag [#allocation8], %s330_s13 }
  0xad   : > { %s3058_s17 = scalar_lea.vmem [#allocation7], %s1980_s6  ;;  %p3737_p4 = scmp.ne.s32.totalorder %s3700_s7, 0 }
  0xaf   : > { %2556 = dma.done.wait (%p3737_p4), %s331_s23, 2048  }
  0xb0   : > { %2558 = vsyncadd (%p3737_p4), %s331_s23, 4294965248  ;;  %s3738_s4 = sld [smem:[#allocation18_spill]]  ;;  %p3739_p1 = scmp.ne.s32.totalorder %s3730_s26, 0 }
  0xb6   : > { %s341_s3 = sand.u32 1, %s3738_s4  }
  0xb7   : > { %s1981_s5 = sshll.u32 %s341_s3, 8 }
  0xb8   : > { %s3065_s14 = scalar_lea.vmem [#allocation9], %s1981_s5 }
  0xb9   : > { %2560 = dma.done.wait (%p3739_p1), %s331_s23, 4096  }
  0xba   : > { %2562 = vsyncadd (%p3739_p1), %s331_s23, 4294963200  ;;  %s3740_s12 = sld [smem:[#allocation23_spill]]  ;;  %s3741_s24 = sld [smem:[#allocation22_spill]] }
  0xbb   : > { %s387_s16 = sand.u32 1, %s2573_s19   ;;  %s3742_s0 = sld [smem:[#allocation39_spill]] }
  0xbc   : > { %s1982_s7 = sshll.u32 %s387_s16, 9  ;;  %s3743_s13 = sld [smem:[#allocation37_spill]] }
  0xbd   : > { %s3093_s6 = scalar_lea.vmem [#allocation10], %s1982_s7 }
  0xc0   : > { %p394_p13 = scmp.eq.s32.totalorder %s3740_s12, 0  ;;  %s3076_s22 = sshll.u32 %s3740_s12, 1 }
  0xc1   : > { %p406_p8 = scmp.lt.s32.totalorder %s3076_s22, 3  ;;  %p1985_p2 = scmp.ne.s32.totalorder %s3741_s24, 0 }
  0xc2   : > { %s395_s27 = scalar_select %p394_p13, %s3741_s24, 0 }
  0xc3   : > { %s3081_s2 = scalar_select %p406_p8, %s3076_s22, 3 }
  0xc4   : > { %s1983_s26 = sshll.u32 %s395_s27, 1  ;;  %416 = sbr.rel (%p1985_p2) target bundleno = 229 (0xe5), region = 56  ;;  %v2649_v0 = vmov (!%p1985_p2), 0.0  }
  0xc5   : > { %p397_p11 = scmp.lt.s32.totalorder %s1983_s26, 3  ;;  %s408_s15 = scalar_lea.vmem %s3742_s0, %s3081_s2  ;;  %417 = vst [vmem:[#allocation2] sm:$0xff] (!%p1985_p2), %v2649_v0  ;;  %418 = vst [vmem:[#allocation2 + $0x8] sm:$0xff] (!%p1985_p2), %v2649_v0 }
  0xc6   : > { %419 = vst [vmem:[#allocation2 + $0x10] sm:$0xff] (!%p1985_p2), %v2649_v0  ;;  %420 = vst [vmem:[#allocation2 + $0x18] sm:$0xff] (!%p1985_p2), %v2649_v0 }
  0xc7   : > { %s3793_s26 = smov (!%p397_p11, %s1983_s26), 3  ;;  %421 = vst [vmem:[#allocation2 + $0x20] sm:$0xff] (!%p1985_p2), %v2649_v0  ;;  %422 = vst [vmem:[#allocation2 + $0x28] sm:$0xff] (!%p1985_p2), %v2649_v0 }
  0xc8   : > { %s399_s18 = scalar_lea.vmem %s3743_s13, %s3793_s26  ;;  %423 = vst [vmem:[#allocation2 + $0x30] sm:$0xff] (!%p1985_p2), %v2649_v0  ;;  %424 = vst [vmem:[#allocation2 + $0x38] sm:$0xff] (!%p1985_p2), %v2649_v0 }
  0xc9   : > { %425 = vst [vmem:[#allocation2 + $0x40] sm:$0xff] (!%p1985_p2), %v2649_v0  ;;  %426 = vst [vmem:[#allocation2 + $0x48] sm:$0xff] (!%p1985_p2), %v2649_v0 }
  0xca   : > { %427 = vst [vmem:[#allocation2 + $0x50] sm:$0xff] (!%p1985_p2), %v2649_v0  ;;  %428 = vst [vmem:[#allocation2 + $0x58] sm:$0xff] (!%p1985_p2), %v2649_v0 }
  0xcb   : > { %429 = vst [vmem:[#allocation2 + $0x60] sm:$0xff] %v2649_v0  ;;  %430 = vst [vmem:[#allocation2 + $0x68] sm:$0xff] %v2649_v0 }
  0xcc   : > { %431 = vst [vmem:[#allocation2 + $0x70] sm:$0xff] %v2649_v0  ;;  %432 = vst [vmem:[#allocation2 + $0x78] sm:$0xff] %v2649_v0 }
  0xcd   : > { %433 = vst [vmem:[#allocation2 + $0x80] sm:$0xff] %v2649_v0  ;;  %434 = vst [vmem:[#allocation2 + $0x88] sm:$0xff] %v2649_v0 }
  0xce   : > { %435 = vst [vmem:[#allocation2 + $0x90] sm:$0xff] %v2649_v0  ;;  %436 = vst [vmem:[#allocation2 + $0x98] sm:$0xff] %v2649_v0 }
  0xcf   : > { %437 = vst [vmem:[#allocation2 + $0xa0] sm:$0xff] %v2649_v0  ;;  %438 = vst [vmem:[#allocation2 + $0xa8] sm:$0xff] %v2649_v0 }
  0xd0   : > { %439 = vst [vmem:[#allocation2 + $0xb0] sm:$0xff] %v2649_v0  ;;  %440 = vst [vmem:[#allocation2 + $0xb8] sm:$0xff] %v2649_v0 }
  0xd1   : > { %441 = vst [vmem:[#allocation2 + $0xc0] sm:$0xff] %v2649_v0  ;;  %442 = vst [vmem:[#allocation2 + $0xc8] sm:$0xff] %v2649_v0 }
  0xd2   : > { %443 = vst [vmem:[#allocation2 + $0xd0] sm:$0xff] %v2649_v0  ;;  %444 = vst [vmem:[#allocation2 + $0xd8] sm:$0xff] %v2649_v0 }
  0xd3   : > { %445 = vst [vmem:[#allocation2 + $0xe0] sm:$0xff] %v2649_v0  ;;  %446 = vst [vmem:[#allocation2 + $0xe8] sm:$0xff] %v2649_v0 }
  0xd4   : > { %447 = vst [vmem:[#allocation2 + $0xf0] sm:$0xff] %v2649_v0  ;;  %448 = vst [vmem:[#allocation2 + $0xf8] sm:$0xff] %v2649_v0 }
  0xd5   : > { %449 = vst [vmem:[#allocation2 + $0x100] sm:$0xff] %v2649_v0  ;;  %450 = vst [vmem:[#allocation2 + $0x108] sm:$0xff] %v2649_v0 }
  0xd6   : > { %451 = vst [vmem:[#allocation2 + $0x110] sm:$0xff] %v2649_v0  ;;  %452 = vst [vmem:[#allocation2 + $0x118] sm:$0xff] %v2649_v0 }
  0xd7   : > { %453 = vst [vmem:[#allocation2 + $0x120] sm:$0xff] %v2649_v0  ;;  %454 = vst [vmem:[#allocation2 + $0x128] sm:$0xff] %v2649_v0 }
  0xd8   : > { %455 = vst [vmem:[#allocation2 + $0x130] sm:$0xff] %v2649_v0  ;;  %456 = vst [vmem:[#allocation2 + $0x138] sm:$0xff] %v2649_v0 }
  0xd9   : > { %457 = vst [vmem:[#allocation2 + $0x140] sm:$0xff] %v2649_v0  ;;  %458 = vst [vmem:[#allocation2 + $0x148] sm:$0xff] %v2649_v0 }
  0xda   : > { %459 = vst [vmem:[#allocation2 + $0x150] sm:$0xff] %v2649_v0  ;;  %460 = vst [vmem:[#allocation2 + $0x158] sm:$0xff] %v2649_v0 }
  0xdb   : > { %461 = vst [vmem:[#allocation2 + $0x160] sm:$0xff] %v2649_v0  ;;  %462 = vst [vmem:[#allocation2 + $0x168] sm:$0xff] %v2649_v0 }
  0xdc   : > { %463 = vst [vmem:[#allocation2 + $0x170] sm:$0xff] %v2649_v0  ;;  %464 = vst [vmem:[#allocation2 + $0x178] sm:$0xff] %v2649_v0 }
  0xdd   : > { %465 = vst [vmem:[#allocation2 + $0x180] sm:$0xff] %v2649_v0  ;;  %466 = vst [vmem:[#allocation2 + $0x188] sm:$0xff] %v2649_v0 }
  0xde   : > { %467 = vst [vmem:[#allocation2 + $0x190] sm:$0xff] %v2649_v0  ;;  %468 = vst [vmem:[#allocation2 + $0x198] sm:$0xff] %v2649_v0 }
  0xdf   : > { %469 = vst [vmem:[#allocation2 + $0x1a0] sm:$0xff] %v2649_v0  ;;  %470 = vst [vmem:[#allocation2 + $0x1a8] sm:$0xff] %v2649_v0 }
  0xe0   : > { %471 = vst [vmem:[#allocation2 + $0x1b0] sm:$0xff] %v2649_v0  ;;  %472 = vst [vmem:[#allocation2 + $0x1b8] sm:$0xff] %v2649_v0 }
  0xe1   : > { %473 = vst [vmem:[#allocation2 + $0x1c0] sm:$0xff] %v2649_v0  ;;  %474 = vst [vmem:[#allocation2 + $0x1c8] sm:$0xff] %v2649_v0 }
  0xe2   : > { %475 = vst [vmem:[#allocation2 + $0x1d0] sm:$0xff] %v2649_v0  ;;  %476 = vst [vmem:[#allocation2 + $0x1d8] sm:$0xff] %v2649_v0 }
  0xe3   : > { %477 = vst [vmem:[#allocation2 + $0x1e0] sm:$0xff] %v2649_v0  ;;  %478 = vst [vmem:[#allocation2 + $0x1e8] sm:$0xff] %v2649_v0 }
  0xe4   : > { %479 = vst [vmem:[#allocation2 + $0x1f0] sm:$0xff] %v2649_v0  ;;  %480 = vst [vmem:[#allocation2 + $0x1f8] sm:$0xff] %v2649_v0 }
  0xe5 PF: > { %s3744_s23 = sld [smem:[#allocation23_spill]] }
  0xeb   : > { %p1986_p0 = scmp.ne.s32.totalorder %s3744_s23, 0 }
  0xec   : > { %v2285_v1 = vld [vmem:[%s3058_s17 + $0x4] ss:$8 sps:$4 sm:$0xff] (!%p1986_p0)   ;;  %v2287_v2 = vld [vmem:[%s3058_s17] ss:$8 sps:$4 sm:$0xff] (!%p1986_p0)   ;;  %v2650_v3 = vmov (!%p1986_p0), 0   ;;  %v487_v24 = vld [vmem:[%s3050_s20 + $0x10] sm:$0xff] (!%p1986_p0) }
  0xed   : > { %484 = sbr.rel (%p1986_p0) target bundleno = 548 (0x224), region = 60  ;;  %673 = vmatprep.mubr.bf16.mxu0 (!%p1986_p0), %v2650_v3  ;;  %753 = vmatprep.mubr.bf16.mxu1 (!%p1986_p0), %v2650_v3  ;;  %v2288_v4 = vld [vmem:[%s3058_s17 + $0x14] ss:$8 sps:$4 sm:$0xff] (!%p1986_p0)   ;;  %v2290_v5 = vld [vmem:[%s3058_s17 + $0x10] ss:$8 sps:$4 sm:$0xff] (!%p1986_p0)   ;;  %v485_v18 = vld [vmem:[%s3050_s20] sm:$0xff] (!%p1986_p0) }
  0xee   : > { %641 = vmatprep.subr.bf16.mxu0 (!%p1986_p0), %v2285_v1  ;;  %2053 = vmatprep.subr.bf16.mxu1 (!%p1986_p0), %v2285_v1  ;;  %v2291_v6 = vld [vmem:[%s3058_s17 + $0x24] ss:$8 sps:$4 sm:$0xff] (!%p1986_p0)   ;;  %v2293_v7 = vld [vmem:[%s3058_s17 + $0x20] ss:$8 sps:$4 sm:$0xff] (!%p1986_p0)   ;;  %v2294_v8 = vld [vmem:[%s3058_s17 + $0x34] ss:$8 sps:$4 sm:$0xff] (!%p1986_p0)  }
  0xef   : > { %642 = vmatpush1.bf16.msra.mxu0 (!%p1986_p0), %v2287_v2  ;;  %2061 = vmatpush1.bf16.msra.mxu1 (!%p1986_p0), %v2287_v2  ;;  %v2296_v9 = vld [vmem:[%s3058_s17 + $0x30] ss:$8 sps:$4 sm:$0xff] (!%p1986_p0)   ;;  %v2297_v10 = vld [vmem:[%s3058_s17 + $0x44] ss:$8 sps:$4 sm:$0xff] (!%p1986_p0)   ;;  %v2299_v11 = vld [vmem:[%s3058_s17 + $0x40] ss:$8 sps:$4 sm:$0xff] (!%p1986_p0)   ;;  %v551_v2 = vlaneseq (!%p1986_p0) }
  0xf0   : > { %643 = vmatprep.subr.bf16.mxu0 (!%p1986_p0), %v2288_v4  ;;  %2054 = vmatprep.subr.bf16.mxu1 (!%p1986_p0), %v2288_v4  ;;  %v2300_v12 = vld [vmem:[%s3058_s17 + $0x54] ss:$8 sps:$4 sm:$0xff] (!%p1986_p0)   ;;  %v2302_v13 = vld [vmem:[%s3058_s17 + $0x50] ss:$8 sps:$4 sm:$0xff] (!%p1986_p0)   ;;  %v2303_v14 = vld [vmem:[%s3058_s17 + $0x64] ss:$8 sps:$4 sm:$0xff] (!%p1986_p0)  }
  0xf1   : > { %v2305_v15 = vld [vmem:[%s3058_s17 + $0x60] ss:$8 sps:$4 sm:$0xff] (!%p1986_p0)   ;;  %v2306_v16 = vld [vmem:[%s3058_s17 + $0x74] ss:$8 sps:$4 sm:$0xff] (!%p1986_p0)   ;;  %v2308_v17 = vld [vmem:[%s3058_s17 + $0x70] ss:$8 sps:$4 sm:$0xff] (!%p1986_p0)  }
  0xf2   : > { %v486_v19 = vld [vmem:[%s3050_s20 + $0x8] sm:$0xff] (!%p1986_p0)  ;;  %v501_v20 = vld [vmem:[%s3050_s20 + $0x80] sm:$0xff] (!%p1986_p0)  ;;  %v488_v25 = vld [vmem:[%s3050_s20 + $0x18] sm:$0xff] (!%p1986_p0)  ;;  %v552_v4 = vshrl.u32 (!%p1986_p0), %v551_v2, 7  ;;  %s3746_s5 = sld [smem:[#allocation22_spill]] (!%p1986_p0) }
  0xf3   : > { %644 = vmatpush1.bf16.msra.mxu0 (!%p1986_p0), %v2290_v5  ;;  %2062 = vmatpush1.bf16.msra.mxu1 (!%p1986_p0), %v2290_v5  ;;  %v502_v21 = vld [vmem:[%s3050_s20 + $0x88] sm:$0xff] (!%p1986_p0)  ;;  %v517_v22 = vpack.c.bf16 (!%p1986_p0), %v486_v19, %v485_v18  ;;  %v503_v26 = vld [vmem:[%s3050_s20 + $0x90] sm:$0xff] (!%p1986_p0)  ;;  %v504_v27 = vld [vmem:[%s3050_s20 + $0x98] sm:$0xff] (!%p1986_p0)  ;;  %v518_v28 = vpack.c.bf16 (!%p1986_p0), %v488_v25, %v487_v24 }
  0xf4   : > { %645 = vmatprep.subr.bf16.mxu0 %v2291_v6  ;;  %2055 = vmatprep.subr.bf16.mxu1 %v2291_v6  ;;  %v525_v23 = vpack.c.bf16 %v502_v21, %v501_v20  ;;  %v526_v29 = vpack.c.bf16 %v504_v27, %v503_v26  ;;  %v489_v30 = vld [vmem:[%s3050_s20 + $0x20] sm:$0xff]  ;;  %v490_v31 = vld [vmem:[%s3050_s20 + $0x28] sm:$0xff]  ;;  %v491_v36 = vld [vmem:[%s3050_s20 + $0x30] sm:$0xff]  ;;  %v553_v5 = vsub.s32 0, %v552_v4 }
  0xf5   : > { %v505_v32 = vld [vmem:[%s3050_s20 + $0xa0] sm:$0xff]  ;;  %v506_v33 = vld [vmem:[%s3050_s20 + $0xa8] sm:$0xff]  ;;  %v519_v34 = vpack.c.bf16 %v490_v31, %v489_v30  ;;  %v492_v37 = vld [vmem:[%s3050_s20 + $0x38] sm:$0xff] }
  0xf6   : > { %v527_v35 = vpack.c.bf16 %v506_v33, %v505_v32  ;;  %v507_v38 = vld [vmem:[%s3050_s20 + $0xb0] sm:$0xff]  ;;  %v508_v39 = vld [vmem:[%s3050_s20 + $0xb8] sm:$0xff]  ;;  %v520_v40 = vpack.c.bf16 %v492_v37, %v491_v36  ;;  %v493_v42 = vld [vmem:[%s3050_s20 + $0x40] sm:$0xff] }
  0xf7   : > { %646 = vmatpush1.bf16.msra.mxu0 %v2293_v7  ;;  %2063 = vmatpush1.bf16.msra.mxu1 %v2293_v7  ;;  %v528_v41 = vpack.c.bf16 %v508_v39, %v507_v38  ;;  %v494_v43 = vld [vmem:[%s3050_s20 + $0x48] sm:$0xff]  ;;  %v509_v44 = vld [vmem:[%s3050_s20 + $0xc0] sm:$0xff]  ;;  %v495_v48 = vld [vmem:[%s3050_s20 + $0x50] sm:$0xff]  ;;  %v557_v7 = vsub.s32 1, %v552_v4 }
  0xf8   : > { %647 = vmatprep.subr.bf16.mxu0 %v2294_v8  ;;  %2056 = vmatprep.subr.bf16.mxu1 %v2294_v8  ;;  %v510_v45 = vld [vmem:[%s3050_s20 + $0xc8] sm:$0xff]  ;;  %v521_v46 = vpack.c.bf16 %v494_v43, %v493_v42  ;;  %v496_v49 = vld [vmem:[%s3050_s20 + $0x58] sm:$0xff]  ;;  %v511_v50 = vld [vmem:[%s3050_s20 + $0xd0] sm:$0xff] }
  0xf9   : > { %v529_v47 = vpack.c.bf16 %v510_v45, %v509_v44  ;;  %v512_v51 = vld [vmem:[%s3050_s20 + $0xd8] sm:$0xff]  ;;  %v522_v52 = vpack.c.bf16 %v496_v49, %v495_v48  ;;  %v497_v54 = vld [vmem:[%s3050_s20 + $0x60] sm:$0xff]  ;;  %v498_v55 = vld [vmem:[%s3050_s20 + $0x68] sm:$0xff] }
  0xfa   : > { %v530_v53 = vpack.c.bf16 %v512_v51, %v511_v50  ;;  %v513_v56 = vld [vmem:[%s3050_s20 + $0xe0] sm:$0xff]  ;;  %v514_v57 = vld [vmem:[%s3050_s20 + $0xe8] sm:$0xff]  ;;  %v523_v58 = vpack.c.bf16 %v498_v55, %v497_v54  ;;  %v499_v60 = vld [vmem:[%s3050_s20 + $0x70] sm:$0xff] }
  0xfb   : > { %648 = vmatpush1.bf16.msra.mxu0 %v2296_v9  ;;  %2064 = vmatpush1.bf16.msra.mxu1 %v2296_v9  ;;  %v531_v59 = vpack.c.bf16 %v514_v57, %v513_v56  ;;  %v500_v61 = vld [vmem:[%s3050_s20 + $0x78] sm:$0xff]  ;;  %v515_v62 = vld [vmem:[%s3050_s20 + $0xf0] sm:$0xff]  ;;  %v549_v6 = vld [vmem:[%s399_s18] sm:$0x3] }
  0xfc   : > { %649 = vmatprep.subr.bf16.mxu0 %v2297_v10  ;;  %2057 = vmatprep.subr.bf16.mxu1 %v2297_v10  ;;  %v516_v63 = vld [vmem:[%s3050_s20 + $0xf8] sm:$0xff]  ;;  %v524_v0 = vpack.c.bf16 %v500_v61, %v499_v60  ;;  %v3230_v8 = vrot.slane %v549_v6, %v553_v5  ;;  %s2050_s20 = sshll.u32 %s3746_s5, 8 }
  0xfd   : > { %v532_v1 = vpack.c.bf16 %v516_v63, %v515_v62  ;;  %s3243_s12 = scalar_lea.vmem [#allocation3], %s2050_s20 }
  0xff   : > { %650 = vmatpush1.bf16.msra.mxu0 %v2299_v11  ;;  %2065 = vmatpush1.bf16.msra.mxu1 %v2299_v11 }
 0x100   : > { %651 = vmatprep.subr.bf16.mxu0 %v2300_v12  ;;  %2058 = vmatprep.subr.bf16.mxu1 %v2300_v12 }
 0x103   : > { %652 = vmatpush1.bf16.msra.mxu0 %v2302_v13  ;;  %2066 = vmatpush1.bf16.msra.mxu1 %v2302_v13 }
 0x104   : > { %653 = vmatprep.subr.bf16.mxu0 %v2303_v14  ;;  %2059 = vmatprep.subr.bf16.mxu1 %v2303_v14 }
 0x107   : > { %654 = vmatpush1.bf16.msra.mxu0 %v2305_v15  ;;  %2067 = vmatpush1.bf16.msra.mxu1 %v2305_v15 }
 0x108   : > { %655 = vmatprep.subr.bf16.mxu0 %v2306_v16  ;;  %2060 = vmatprep.subr.bf16.mxu1 %v2306_v16 }
 0x10b   : > { %656 = vmatpush1.bf16.msra.mxu0 %v2308_v17  ;;  %2068 = vmatpush1.bf16.msra.mxu1 %v2308_v17 }
 0x10e   : > { %674 = vmatmul.mubr.bf16.vlgmr.msra.gmra.mrb[0].mxu0 %v517_v22  ;;  %754 = vmatmul.mubr.bf16.vlgmr.msra.gmra.mrb[0].mxu1 %v525_v23 }
 0x10f   : > { %683 = vmatprep.mubr.bf16.mxu0 %v2650_v3  ;;  %763 = vmatprep.mubr.bf16.mxu1 %v2650_v3 }
 0x116   : > { %684 = vmatmul.mubr.bf16.gmra.mrb[4].mxu0 %v518_v28  ;;  %764 = vmatmul.mubr.bf16.gmra.mrb[4].mxu1 %v526_v29 }
 0x117   : > { %693 = vmatprep.mubr.bf16.mxu0 %v2650_v3  ;;  %773 = vmatprep.mubr.bf16.mxu1 %v2650_v3 }
 0x11e   : > { %694 = vmatmul.mubr.bf16.gmra.mrb[8].mxu0 %v519_v34  ;;  %774 = vmatmul.mubr.bf16.gmra.mrb[8].mxu1 %v527_v35 }
 0x11f   : > { %703 = vmatprep.mubr.bf16.mxu0 %v2650_v3  ;;  %783 = vmatprep.mubr.bf16.mxu1 %v2650_v3 }
 0x126   : > { %704 = vmatmul.mubr.bf16.gmra.mrb[12].mxu0 %v520_v40  ;;  %784 = vmatmul.mubr.bf16.gmra.mrb[12].mxu1 %v528_v41 }
 0x127   : > { %713 = vmatprep.mubr.bf16.mxu0 %v2650_v3  ;;  %793 = vmatprep.mubr.bf16.mxu1 %v2650_v3 }
 0x12e   : > { %714 = vmatmul.mubr.bf16.gmra.mrb[16].mxu0 %v521_v46  ;;  %794 = vmatmul.mubr.bf16.gmra.mrb[16].mxu1 %v529_v47 }
 0x12f   : > { %723 = vmatprep.mubr.bf16.mxu0 %v2650_v3  ;;  %803 = vmatprep.mubr.bf16.mxu1 %v2650_v3 }
 0x136   : > { %724 = vmatmul.mubr.bf16.gmra.mrb[20].mxu0 %v522_v52  ;;  %804 = vmatmul.mubr.bf16.gmra.mrb[20].mxu1 %v530_v53 }
 0x137   : > { %733 = vmatprep.mubr.bf16.mxu0 %v2650_v3  ;;  %813 = vmatprep.mubr.bf16.mxu1 %v2650_v3 }
 0x13e   : > { %734 = vmatmul.mubr.bf16.gmra.mrb[24].mxu0 %v523_v58  ;;  %814 = vmatmul.mubr.bf16.gmra.mrb[24].mxu1 %v531_v59 }
 0x13f   : > { %743 = vmatprep.mubr.bf16.mxu0 %v2650_v3  ;;  %823 = vmatprep.mubr.bf16.mxu1 %v2650_v3  ;;  %v3232_v3 = vrot.slane %v549_v6, %v557_v7 }
 0x146   : > { %744 = vmatmul.mubr.bf16.gmra.mrb[28].mxu0 %v524_v0  ;;  %824 = vmatmul.mubr.bf16.gmra.mrb[28].mxu1 %v532_v1 }
 0x1e1   : > { %v675_v9 = vpop.f32.mrb[0].mxu0  ;;  %v755_v10 = vpop.f32.mrb[0].mxu1 }
 0x1e2   : > { %v676_v11 = vadd.f32 %v675_v9, %v3230_v8  ;;  %v756_v12 = vadd.f32 %v755_v10, %v3230_v8  ;;  %v677_v13 = vpop.f32.mrb[1].mxu0  ;;  %v757_v14 = vpop.f32.mrb[1].mxu1 }
 0x1e3   : > { %v678_v15 = vadd.f32 %v677_v13, %v3232_v3  ;;  %v758_v16 = vadd.f32 %v757_v14, %v3232_v3  ;;  %v679_v17 = vpop.f32.mrb[2].mxu0  ;;  %v759_v18 = vpop.f32.mrb[2].mxu1 }
 0x1e4   : > { %v680_v19 = vadd.f32 %v679_v17, %v3230_v8  ;;  %v760_v20 = vadd.f32 %v759_v18, %v3230_v8  ;;  %v681_v21 = vpop.f32.mrb[3].mxu0  ;;  %v761_v22 = vpop.f32.mrb[3].mxu1  ;;  %v834_v25 = vmax.f32 %v676_v11, 0.0  ;;  %v866_v26 = vmax.f32 %v756_v12, 0.0 }
 0x1e5   : > { %v682_v23 = vadd.f32 %v681_v21, %v3232_v3  ;;  %v762_v24 = vadd.f32 %v761_v22, %v3232_v3  ;;  %v835_v29 = vmax.f32 %v678_v15, 0.0  ;;  %v867_v30 = vmax.f32 %v758_v16, 0.0 }
 0x1e6   : > { %v836_v27 = vmax.f32 %v680_v19, 0.0  ;;  %v868_v28 = vmax.f32 %v760_v20, 0.0 }
 0x1e7   : > { %v837_v31 = vmax.f32 %v682_v23, 0.0  ;;  %v869_v32 = vmax.f32 %v762_v24, 0.0 }
 0x1e8   : > { %v898_v33 = vpack.c.bf16 %v836_v27, %v834_v25  ;;  %v914_v34 = vpack.c.bf16 %v868_v28, %v866_v26 }
 0x1e9   : > { %v899_v35 = vpack.c.bf16 %v837_v31, %v835_v29  ;;  %v915_v36 = vpack.c.bf16 %v869_v32, %v867_v30  ;;  %v685_v37 = vpop.f32.mrb[4].mxu0  ;;  %v765_v38 = vpop.f32.mrb[4].mxu1 }
 0x1ea   : > { %933 = vst [vmem:[%s3243_s12] sm:$0xff] %v898_v33  ;;  %949 = vst [vmem:[%s3243_s12 + $0x80] sm:$0xff] %v914_v34  ;;  %v686_v39 = vadd.f32 %v685_v37, %v3230_v8  ;;  %v766_v40 = vadd.f32 %v765_v38, %v3230_v8  ;;  %v687_v41 = vpop.f32.mrb[5].mxu0  ;;  %v767_v42 = vpop.f32.mrb[5].mxu1 }
 0x1eb   : > { %934 = vst [vmem:[%s3243_s12 + $0x8] sm:$0xff] %v899_v35  ;;  %950 = vst [vmem:[%s3243_s12 + $0x88] sm:$0xff] %v915_v36  ;;  %v688_v43 = vadd.f32 %v687_v41, %v3232_v3  ;;  %v768_v44 = vadd.f32 %v767_v42, %v3232_v3  ;;  %v689_v45 = vpop.f32.mrb[6].mxu0  ;;  %v769_v46 = vpop.f32.mrb[6].mxu1 }
 0x1ec   : > { %v690_v47 = vadd.f32 %v689_v45, %v3230_v8  ;;  %v770_v48 = vadd.f32 %v769_v46, %v3230_v8  ;;  %v691_v49 = vpop.f32.mrb[7].mxu0  ;;  %v771_v50 = vpop.f32.mrb[7].mxu1  ;;  %v838_v53 = vmax.f32 %v686_v39, 0.0  ;;  %v870_v54 = vmax.f32 %v766_v40, 0.0 }
 0x1ed   : > { %v692_v51 = vadd.f32 %v691_v49, %v3232_v3  ;;  %v772_v52 = vadd.f32 %v771_v50, %v3232_v3  ;;  %v839_v57 = vmax.f32 %v688_v43, 0.0  ;;  %v871_v58 = vmax.f32 %v768_v44, 0.0 }
 0x1ee   : > { %v840_v55 = vmax.f32 %v690_v47, 0.0  ;;  %v872_v56 = vmax.f32 %v770_v48, 0.0 }
 0x1ef   : > { %v841_v59 = vmax.f32 %v692_v51, 0.0  ;;  %v873_v60 = vmax.f32 %v772_v52, 0.0 }
 0x1f0   : > { %v900_v61 = vpack.c.bf16 %v840_v55, %v838_v53  ;;  %v916_v62 = vpack.c.bf16 %v872_v56, %v870_v54 }
 0x1f1   : > { %v901_v63 = vpack.c.bf16 %v841_v59, %v839_v57  ;;  %v917_v0 = vpack.c.bf16 %v873_v60, %v871_v58  ;;  %v695_v1 = vpop.f32.mrb[8].mxu0  ;;  %v775_v2 = vpop.f32.mrb[8].mxu1 }
 0x1f2   : > { %935 = vst [vmem:[%s3243_s12 + $0x10] sm:$0xff] %v900_v61  ;;  %951 = vst [vmem:[%s3243_s12 + $0x90] sm:$0xff] %v916_v62  ;;  %v696_v4 = vadd.f32 %v695_v1, %v3230_v8  ;;  %v776_v5 = vadd.f32 %v775_v2, %v3230_v8  ;;  %v697_v6 = vpop.f32.mrb[9].mxu0  ;;  %v777_v7 = vpop.f32.mrb[9].mxu1 }
 0x1f3   : > { %936 = vst [vmem:[%s3243_s12 + $0x18] sm:$0xff] %v901_v63  ;;  %952 = vst [vmem:[%s3243_s12 + $0x98] sm:$0xff] %v917_v0  ;;  %v698_v9 = vadd.f32 %v697_v6, %v3232_v3  ;;  %v778_v10 = vadd.f32 %v777_v7, %v3232_v3  ;;  %v699_v11 = vpop.f32.mrb[10].mxu0  ;;  %v779_v12 = vpop.f32.mrb[10].mxu1 }
 0x1f4   : > { %v700_v13 = vadd.f32 %v699_v11, %v3230_v8  ;;  %v780_v14 = vadd.f32 %v779_v12, %v3230_v8  ;;  %v701_v15 = vpop.f32.mrb[11].mxu0  ;;  %v781_v16 = vpop.f32.mrb[11].mxu1  ;;  %v842_v19 = vmax.f32 %v696_v4, 0.0  ;;  %v874_v20 = vmax.f32 %v776_v5, 0.0 }
 0x1f5   : > { %v702_v17 = vadd.f32 %v701_v15, %v3232_v3  ;;  %v782_v18 = vadd.f32 %v781_v16, %v3232_v3  ;;  %v843_v23 = vmax.f32 %v698_v9, 0.0  ;;  %v875_v24 = vmax.f32 %v778_v10, 0.0 }
 0x1f6   : > { %v844_v21 = vmax.f32 %v700_v13, 0.0  ;;  %v876_v22 = vmax.f32 %v780_v14, 0.0 }
 0x1f7   : > { %v845_v25 = vmax.f32 %v702_v17, 0.0  ;;  %v877_v26 = vmax.f32 %v782_v18, 0.0 }
 0x1f8   : > { %v902_v27 = vpack.c.bf16 %v844_v21, %v842_v19  ;;  %v918_v28 = vpack.c.bf16 %v876_v22, %v874_v20 }
 0x1f9   : > { %v903_v29 = vpack.c.bf16 %v845_v25, %v843_v23  ;;  %v919_v30 = vpack.c.bf16 %v877_v26, %v875_v24  ;;  %v705_v31 = vpop.f32.mrb[12].mxu0  ;;  %v785_v32 = vpop.f32.mrb[12].mxu1 }
 0x1fa   : > { %937 = vst [vmem:[%s3243_s12 + $0x20] sm:$0xff] %v902_v27  ;;  %953 = vst [vmem:[%s3243_s12 + $0xa0] sm:$0xff] %v918_v28  ;;  %v706_v33 = vadd.f32 %v705_v31, %v3230_v8  ;;  %v786_v34 = vadd.f32 %v785_v32, %v3230_v8  ;;  %v707_v35 = vpop.f32.mrb[13].mxu0  ;;  %v787_v36 = vpop.f32.mrb[13].mxu1 }
 0x1fb   : > { %938 = vst [vmem:[%s3243_s12 + $0x28] sm:$0xff] %v903_v29  ;;  %954 = vst [vmem:[%s3243_s12 + $0xa8] sm:$0xff] %v919_v30  ;;  %v708_v37 = vadd.f32 %v707_v35, %v3232_v3  ;;  %v788_v38 = vadd.f32 %v787_v36, %v3232_v3  ;;  %v709_v39 = vpop.f32.mrb[14].mxu0  ;;  %v789_v40 = vpop.f32.mrb[14].mxu1 }
 0x1fc   : > { %v710_v41 = vadd.f32 %v709_v39, %v3230_v8  ;;  %v790_v42 = vadd.f32 %v789_v40, %v3230_v8  ;;  %v711_v43 = vpop.f32.mrb[15].mxu0  ;;  %v791_v44 = vpop.f32.mrb[15].mxu1  ;;  %v846_v47 = vmax.f32 %v706_v33, 0.0  ;;  %v878_v48 = vmax.f32 %v786_v34, 0.0 }
 0x1fd   : > { %v712_v45 = vadd.f32 %v711_v43, %v3232_v3  ;;  %v792_v46 = vadd.f32 %v791_v44, %v3232_v3  ;;  %v847_v51 = vmax.f32 %v708_v37, 0.0  ;;  %v879_v52 = vmax.f32 %v788_v38, 0.0 }
 0x1fe   : > { %v848_v49 = vmax.f32 %v710_v41, 0.0  ;;  %v880_v50 = vmax.f32 %v790_v42, 0.0 }
 0x1ff   : > { %v849_v53 = vmax.f32 %v712_v45, 0.0  ;;  %v881_v54 = vmax.f32 %v792_v46, 0.0 }
 0x200   : > { %v904_v55 = vpack.c.bf16 %v848_v49, %v846_v47  ;;  %v920_v56 = vpack.c.bf16 %v880_v50, %v878_v48 }
 0x201   : > { %v905_v57 = vpack.c.bf16 %v849_v53, %v847_v51  ;;  %v921_v58 = vpack.c.bf16 %v881_v54, %v879_v52  ;;  %v715_v59 = vpop.f32.mrb[16].mxu0  ;;  %v795_v60 = vpop.f32.mrb[16].mxu1 }
 0x202   : > { %939 = vst [vmem:[%s3243_s12 + $0x30] sm:$0xff] %v904_v55  ;;  %955 = vst [vmem:[%s3243_s12 + $0xb0] sm:$0xff] %v920_v56  ;;  %v716_v61 = vadd.f32 %v715_v59, %v3230_v8  ;;  %v796_v62 = vadd.f32 %v795_v60, %v3230_v8  ;;  %v717_v63 = vpop.f32.mrb[17].mxu0  ;;  %v797_v0 = vpop.f32.mrb[17].mxu1 }
 0x203   : > { %940 = vst [vmem:[%s3243_s12 + $0x38] sm:$0xff] %v905_v57  ;;  %956 = vst [vmem:[%s3243_s12 + $0xb8] sm:$0xff] %v921_v58  ;;  %v718_v1 = vadd.f32 %v717_v63, %v3232_v3  ;;  %v798_v2 = vadd.f32 %v797_v0, %v3232_v3  ;;  %v719_v4 = vpop.f32.mrb[18].mxu0  ;;  %v799_v5 = vpop.f32.mrb[18].mxu1 }
 0x204   : > { %v720_v6 = vadd.f32 %v719_v4, %v3230_v8  ;;  %v800_v7 = vadd.f32 %v799_v5, %v3230_v8  ;;  %v721_v9 = vpop.f32.mrb[19].mxu0  ;;  %v801_v10 = vpop.f32.mrb[19].mxu1  ;;  %v850_v13 = vmax.f32 %v716_v61, 0.0  ;;  %v882_v14 = vmax.f32 %v796_v62, 0.0 }
 0x205   : > { %v722_v11 = vadd.f32 %v721_v9, %v3232_v3  ;;  %v802_v12 = vadd.f32 %v801_v10, %v3232_v3  ;;  %v851_v17 = vmax.f32 %v718_v1, 0.0  ;;  %v883_v18 = vmax.f32 %v798_v2, 0.0 }
 0x206   : > { %v852_v15 = vmax.f32 %v720_v6, 0.0  ;;  %v884_v16 = vmax.f32 %v800_v7, 0.0 }
 0x207   : > { %v853_v19 = vmax.f32 %v722_v11, 0.0  ;;  %v885_v20 = vmax.f32 %v802_v12, 0.0 }
 0x208   : > { %v906_v21 = vpack.c.bf16 %v852_v15, %v850_v13  ;;  %v922_v22 = vpack.c.bf16 %v884_v16, %v882_v14 }
 0x209   : > { %v907_v23 = vpack.c.bf16 %v853_v19, %v851_v17  ;;  %v923_v24 = vpack.c.bf16 %v885_v20, %v883_v18  ;;  %v725_v25 = vpop.f32.mrb[20].mxu0  ;;  %v805_v26 = vpop.f32.mrb[20].mxu1 }
 0x20a   : > { %941 = vst [vmem:[%s3243_s12 + $0x40] sm:$0xff] %v906_v21  ;;  %957 = vst [vmem:[%s3243_s12 + $0xc0] sm:$0xff] %v922_v22  ;;  %v726_v27 = vadd.f32 %v725_v25, %v3230_v8  ;;  %v806_v28 = vadd.f32 %v805_v26, %v3230_v8  ;;  %v727_v29 = vpop.f32.mrb[21].mxu0  ;;  %v807_v30 = vpop.f32.mrb[21].mxu1 }
 0x20b   : > { %942 = vst [vmem:[%s3243_s12 + $0x48] sm:$0xff] %v907_v23  ;;  %958 = vst [vmem:[%s3243_s12 + $0xc8] sm:$0xff] %v923_v24  ;;  %v728_v31 = vadd.f32 %v727_v29, %v3232_v3  ;;  %v808_v32 = vadd.f32 %v807_v30, %v3232_v3  ;;  %v729_v33 = vpop.f32.mrb[22].mxu0  ;;  %v809_v34 = vpop.f32.mrb[22].mxu1 }
 0x20c   : > { %v730_v35 = vadd.f32 %v729_v33, %v3230_v8  ;;  %v810_v36 = vadd.f32 %v809_v34, %v3230_v8  ;;  %v731_v37 = vpop.f32.mrb[23].mxu0  ;;  %v811_v38 = vpop.f32.mrb[23].mxu1  ;;  %v854_v41 = vmax.f32 %v726_v27, 0.0  ;;  %v886_v42 = vmax.f32 %v806_v28, 0.0 }
 0x20d   : > { %v732_v39 = vadd.f32 %v731_v37, %v3232_v3  ;;  %v812_v40 = vadd.f32 %v811_v38, %v3232_v3  ;;  %v855_v45 = vmax.f32 %v728_v31, 0.0  ;;  %v887_v46 = vmax.f32 %v808_v32, 0.0 }
 0x20e   : > { %v856_v43 = vmax.f32 %v730_v35, 0.0  ;;  %v888_v44 = vmax.f32 %v810_v36, 0.0 }
 0x20f   : > { %v857_v47 = vmax.f32 %v732_v39, 0.0  ;;  %v889_v48 = vmax.f32 %v812_v40, 0.0 }
 0x210   : > { %v908_v49 = vpack.c.bf16 %v856_v43, %v854_v41  ;;  %v924_v50 = vpack.c.bf16 %v888_v44, %v886_v42 }
 0x211   : > { %v909_v51 = vpack.c.bf16 %v857_v47, %v855_v45  ;;  %v925_v52 = vpack.c.bf16 %v889_v48, %v887_v46  ;;  %v735_v53 = vpop.f32.mrb[24].mxu0  ;;  %v815_v54 = vpop.f32.mrb[24].mxu1 }
 0x212   : > { %943 = vst [vmem:[%s3243_s12 + $0x50] sm:$0xff] %v908_v49  ;;  %959 = vst [vmem:[%s3243_s12 + $0xd0] sm:$0xff] %v924_v50  ;;  %v736_v55 = vadd.f32 %v735_v53, %v3230_v8  ;;  %v816_v56 = vadd.f32 %v815_v54, %v3230_v8  ;;  %v737_v57 = vpop.f32.mrb[25].mxu0  ;;  %v817_v58 = vpop.f32.mrb[25].mxu1 }
 0x213   : > { %944 = vst [vmem:[%s3243_s12 + $0x58] sm:$0xff] %v909_v51  ;;  %960 = vst [vmem:[%s3243_s12 + $0xd8] sm:$0xff] %v925_v52  ;;  %v738_v59 = vadd.f32 %v737_v57, %v3232_v3  ;;  %v818_v60 = vadd.f32 %v817_v58, %v3232_v3  ;;  %v739_v61 = vpop.f32.mrb[26].mxu0  ;;  %v819_v62 = vpop.f32.mrb[26].mxu1 }
 0x214   : > { %v740_v63 = vadd.f32 %v739_v61, %v3230_v8  ;;  %v820_v0 = vadd.f32 %v819_v62, %v3230_v8  ;;  %v741_v1 = vpop.f32.mrb[27].mxu0  ;;  %v821_v2 = vpop.f32.mrb[27].mxu1  ;;  %v858_v6 = vmax.f32 %v736_v55, 0.0  ;;  %v890_v7 = vmax.f32 %v816_v56, 0.0 }
 0x215   : > { %v742_v4 = vadd.f32 %v741_v1, %v3232_v3  ;;  %v822_v5 = vadd.f32 %v821_v2, %v3232_v3  ;;  %v859_v11 = vmax.f32 %v738_v59, 0.0  ;;  %v891_v12 = vmax.f32 %v818_v60, 0.0 }
 0x216   : > { %v860_v9 = vmax.f32 %v740_v63, 0.0  ;;  %v892_v10 = vmax.f32 %v820_v0, 0.0 }
 0x217   : > { %v861_v13 = vmax.f32 %v742_v4, 0.0  ;;  %v893_v14 = vmax.f32 %v822_v5, 0.0 }
 0x218   : > { %v910_v15 = vpack.c.bf16 %v860_v9, %v858_v6  ;;  %v926_v16 = vpack.c.bf16 %v892_v10, %v890_v7 }
 0x219   : > { %v911_v17 = vpack.c.bf16 %v861_v13, %v859_v11  ;;  %v927_v18 = vpack.c.bf16 %v893_v14, %v891_v12  ;;  %v745_v19 = vpop.f32.mrb[28].mxu0  ;;  %v825_v20 = vpop.f32.mrb[28].mxu1 }
 0x21a   : > { %945 = vst [vmem:[%s3243_s12 + $0x60] sm:$0xff] %v910_v15  ;;  %961 = vst [vmem:[%s3243_s12 + $0xe0] sm:$0xff] %v926_v16  ;;  %v746_v21 = vadd.f32 %v745_v19, %v3230_v8  ;;  %v826_v22 = vadd.f32 %v825_v20, %v3230_v8  ;;  %v747_v23 = vpop.f32.mrb[29].mxu0  ;;  %v827_v24 = vpop.f32.mrb[29].mxu1 }
 0x21b   : > { %946 = vst [vmem:[%s3243_s12 + $0x68] sm:$0xff] %v911_v17  ;;  %962 = vst [vmem:[%s3243_s12 + $0xe8] sm:$0xff] %v927_v18  ;;  %v748_v25 = vadd.f32 %v747_v23, %v3232_v3  ;;  %v828_v26 = vadd.f32 %v827_v24, %v3232_v3  ;;  %v749_v27 = vpop.f32.mrb[30].mxu0  ;;  %v829_v28 = vpop.f32.mrb[30].mxu1 }
 0x21c   : > { %v750_v29 = vadd.f32 %v749_v27, %v3230_v8  ;;  %v830_v30 = vadd.f32 %v829_v28, %v3230_v8  ;;  %v751_v31 = vpop.f32.mrb[31].mxu0  ;;  %v831_v32 = vpop.f32.mrb[31].mxu1  ;;  %v862_v35 = vmax.f32 %v746_v21, 0.0  ;;  %v894_v36 = vmax.f32 %v826_v22, 0.0 }
 0x21d   : > { %v752_v33 = vadd.f32 %v751_v31, %v3232_v3  ;;  %v832_v34 = vadd.f32 %v831_v32, %v3232_v3  ;;  %v863_v39 = vmax.f32 %v748_v25, 0.0  ;;  %v895_v40 = vmax.f32 %v828_v26, 0.0 }
 0x21e   : > { %v864_v37 = vmax.f32 %v750_v29, 0.0  ;;  %v896_v38 = vmax.f32 %v830_v30, 0.0 }
 0x21f   : > { %v865_v41 = vmax.f32 %v752_v33, 0.0  ;;  %v897_v42 = vmax.f32 %v832_v34, 0.0 }
 0x220   : > { %v912_v43 = vpack.c.bf16 %v864_v37, %v862_v35  ;;  %v928_v8 = vpack.c.bf16 %v896_v38, %v894_v36 }
 0x221   : > { %v913_v44 = vpack.c.bf16 %v865_v41, %v863_v39  ;;  %v929_v45 = vpack.c.bf16 %v897_v42, %v895_v40 }
 0x222   : > { %947 = vst [vmem:[%s3243_s12 + $0x70] sm:$0xff] %v912_v43  ;;  %963 = vst [vmem:[%s3243_s12 + $0xf0] sm:$0xff] %v928_v8 }
 0x223   : > { %948 = vst [vmem:[%s3243_s12 + $0x78] sm:$0xff] %v913_v44  ;;  %964 = vst [vmem:[%s3243_s12 + $0xf8] sm:$0xff] %v929_v45 }
 0x224 PF: > { %v2309_v3 = vld [vmem:[%s3065_s14 + $0x4] ss:$8 sps:$4 sm:$0xff]   ;;  %v2311_v46 = vld [vmem:[%s3065_s14] ss:$8 sps:$4 sm:$0xff]   ;;  %v2312_v47 = vld [vmem:[%s3065_s14 + $0x14] ss:$8 sps:$4 sm:$0xff]  }
 0x225   : > { %1256 = vmatprep.subr.bf16.mxu0 %v2309_v3  ;;  %2069 = vmatprep.subr.bf16.mxu1 %v2309_v3  ;;  %v2314_v48 = vld [vmem:[%s3065_s14 + $0x10] ss:$8 sps:$4 sm:$0xff]   ;;  %v2315_v49 = vld [vmem:[%s3065_s14 + $0x24] ss:$8 sps:$4 sm:$0xff]   ;;  %s3747_s24 = sld [smem:[#allocation22_spill]] }
 0x226   : > { %1257 = vmatpush1.bf16.msra.mxu0 %v2311_v46  ;;  %2085 = vmatpush1.bf16.msra.mxu1 %v2311_v46  ;;  %v2317_v50 = vld [vmem:[%s3065_s14 + $0x20] ss:$8 sps:$4 sm:$0xff]   ;;  %v2318_v51 = vld [vmem:[%s3065_s14 + $0x34] ss:$8 sps:$4 sm:$0xff]   ;;  %v2320_v52 = vld [vmem:[%s3065_s14 + $0x30] ss:$8 sps:$4 sm:$0xff]  }
 0x227   : > { %1258 = vmatprep.subr.bf16.mxu0 %v2312_v47  ;;  %2070 = vmatprep.subr.bf16.mxu1 %v2312_v47  ;;  %v2321_v53 = vld [vmem:[%s3065_s14 + $0x44] ss:$8 sps:$4 sm:$0xff]   ;;  %v2323_v54 = vld [vmem:[%s3065_s14 + $0x40] ss:$8 sps:$4 sm:$0xff]   ;;  %v2324_v55 = vld [vmem:[%s3065_s14 + $0x54] ss:$8 sps:$4 sm:$0xff]  }
 0x228   : > { %v2326_v56 = vld [vmem:[%s3065_s14 + $0x50] ss:$8 sps:$4 sm:$0xff]   ;;  %v2327_v57 = vld [vmem:[%s3065_s14 + $0x64] ss:$8 sps:$4 sm:$0xff]   ;;  %v2329_v60 = vld [vmem:[%s3065_s14 + $0x60] ss:$8 sps:$4 sm:$0xff]  }
 0x229   : > { %v2330_v61 = vld [vmem:[%s3065_s14 + $0x74] ss:$8 sps:$4 sm:$0xff]   ;;  %v2332_v62 = vld [vmem:[%s3065_s14 + $0x70] ss:$8 sps:$4 sm:$0xff]   ;;  %v2333_v63 = vld [vmem:[%s3065_s14 + $0x84] ss:$8 sps:$4 sm:$0xff]  }
 0x22a   : > { %1259 = vmatpush1.bf16.msra.mxu0 %v2314_v48  ;;  %2086 = vmatpush1.bf16.msra.mxu1 %v2314_v48  ;;  %v2335_v0 = vld [vmem:[%s3065_s14 + $0x80] ss:$8 sps:$4 sm:$0xff]   ;;  %v2336_v1 = vld [vmem:[%s3065_s14 + $0x94] ss:$8 sps:$4 sm:$0xff]   ;;  %v2338_v2 = vld [vmem:[%s3065_s14 + $0x90] ss:$8 sps:$4 sm:$0xff]  }
 0x22b   : > { %1260 = vmatprep.subr.bf16.mxu0 %v2315_v49  ;;  %2071 = vmatprep.subr.bf16.mxu1 %v2315_v49  ;;  %s2051_s7 = sshll.u32 %s3747_s24, 8  ;;  %v2339_v4 = vld [vmem:[%s3065_s14 + $0xa4] ss:$8 sps:$4 sm:$0xff]   ;;  %v2341_v5 = vld [vmem:[%s3065_s14 + $0xa0] ss:$8 sps:$4 sm:$0xff]   ;;  %p2039_p7 = scmp.ne.s32.totalorder %s3747_s24, 1 }
 0x22c   : > { %s3347_s27 = scalar_lea.vmem [#allocation3], %s2051_s7  ;;  %v2342_v6 = vld [vmem:[%s3065_s14 + $0xb4] ss:$8 sps:$4 sm:$0xff]   ;;  %v2344_v7 = vld [vmem:[%s3065_s14 + $0xb0] ss:$8 sps:$4 sm:$0xff]   ;;  %v965_v3 = vld [vmem:[#allocation2] sm:$0xff] }
 0x22d   : > { %v1033_v58 = vld [vmem:[%s3347_s27 + $0x8] sm:$0xff]  ;;  %v2348_v11 = vld [vmem:[%s3065_s14 + $0xd4] ss:$8 sps:$4 sm:$0xff]   ;;  %v2350_v12 = vld [vmem:[%s3065_s14 + $0xd0] ss:$8 sps:$4 sm:$0xff]  }
 0x22e   : > { %1261 = vmatpush1.bf16.msra.mxu0 %v2317_v50  ;;  %2087 = vmatpush1.bf16.msra.mxu1 %v2317_v50  ;;  %v1049_v59 = vld [vmem:[%s3347_s27 + $0x88] sm:$0xff]  ;;  %v2354_v15 = vld [vmem:[%s3065_s14 + $0xf4] ss:$8 sps:$4 sm:$0xff]   ;;  %v2356_v16 = vld [vmem:[%s3065_s14 + $0xf0] ss:$8 sps:$4 sm:$0xff]  }
 0x22f   : > { %1262 = vmatprep.subr.bf16.mxu0 %v2318_v51  ;;  %2072 = vmatprep.subr.bf16.mxu1 %v2318_v51  ;;  %v2345_v9 = vld [vmem:[%s3065_s14 + $0xc4] ss:$8 sps:$4 sm:$0xff]   ;;  %v2347_v10 = vld [vmem:[%s3065_s14 + $0xc0] ss:$8 sps:$4 sm:$0xff]   ;;  %v1035_v19 = vld [vmem:[%s3347_s27 + $0x18] sm:$0xff] }
 0x230   : > { %1288 = vmatprep.mubr.bf16.mxu0 %v1033_v58  ;;  %1368 = vmatprep.mubr.bf16.mxu1 %v1049_v59  ;;  %v2351_v13 = vld [vmem:[%s3065_s14 + $0xe4] ss:$8 sps:$4 sm:$0xff]   ;;  %v2353_v14 = vld [vmem:[%s3065_s14 + $0xe0] ss:$8 sps:$4 sm:$0xff]   ;;  %v1051_v20 = vld [vmem:[%s3347_s27 + $0x98] sm:$0xff] }
 0x231   : > { %v1032_v17 = vld [vmem:[%s3347_s27] sm:$0xff]  ;;  %v1034_v21 = vld [vmem:[%s3347_s27 + $0x10] sm:$0xff]  ;;  %v1037_v23 = vld [vmem:[%s3347_s27 + $0x28] sm:$0xff] }
 0x232   : > { %1263 = vmatpush1.bf16.msra.mxu0 %v2320_v52  ;;  %2088 = vmatpush1.bf16.msra.mxu1 %v2320_v52  ;;  %v1048_v18 = vld [vmem:[%s3347_s27 + $0x80] sm:$0xff]  ;;  %v1050_v22 = vld [vmem:[%s3347_s27 + $0x90] sm:$0xff]  ;;  %v1053_v24 = vld [vmem:[%s3347_s27 + $0xa8] sm:$0xff] }
 0x233   : > { %1264 = vmatprep.subr.bf16.mxu0 %v2321_v53  ;;  %2073 = vmatprep.subr.bf16.mxu1 %v2321_v53  ;;  %v1036_v25 = vld [vmem:[%s3347_s27 + $0x20] sm:$0xff]  ;;  %v1039_v27 = vld [vmem:[%s3347_s27 + $0x38] sm:$0xff]  ;;  %v1038_v29 = vld [vmem:[%s3347_s27 + $0x30] sm:$0xff] }
 0x234   : > { %v1052_v26 = vld [vmem:[%s3347_s27 + $0xa0] sm:$0xff]  ;;  %v1055_v28 = vld [vmem:[%s3347_s27 + $0xb8] sm:$0xff]  ;;  %v1054_v30 = vld [vmem:[%s3347_s27 + $0xb0] sm:$0xff] }
 0x235   : > { %v1041_v31 = vld [vmem:[%s3347_s27 + $0x48] sm:$0xff]  ;;  %v1040_v33 = vld [vmem:[%s3347_s27 + $0x40] sm:$0xff]  ;;  %v1043_v35 = vld [vmem:[%s3347_s27 + $0x58] sm:$0xff] }
 0x236   : > { %1265 = vmatpush1.bf16.msra.mxu0 %v2323_v54  ;;  %2089 = vmatpush1.bf16.msra.mxu1 %v2323_v54  ;;  %v1057_v32 = vld [vmem:[%s3347_s27 + $0xc8] sm:$0xff]  ;;  %v1056_v34 = vld [vmem:[%s3347_s27 + $0xc0] sm:$0xff]  ;;  %v1059_v36 = vld [vmem:[%s3347_s27 + $0xd8] sm:$0xff] }
 0x237   : > { %1266 = vmatprep.subr.bf16.mxu0 %v2324_v55  ;;  %2074 = vmatprep.subr.bf16.mxu1 %v2324_v55  ;;  %v1042_v37 = vld [vmem:[%s3347_s27 + $0x50] sm:$0xff]  ;;  %v1045_v39 = vld [vmem:[%s3347_s27 + $0x68] sm:$0xff]  ;;  %v1044_v41 = vld [vmem:[%s3347_s27 + $0x60] sm:$0xff] }
 0x238   : > { %v1058_v38 = vld [vmem:[%s3347_s27 + $0xd0] sm:$0xff]  ;;  %v1061_v40 = vld [vmem:[%s3347_s27 + $0xe8] sm:$0xff]  ;;  %v1060_v42 = vld [vmem:[%s3347_s27 + $0xe0] sm:$0xff] }
 0x239   : > { %v1047_v43 = vld [vmem:[%s3347_s27 + $0x78] sm:$0xff]  ;;  %v1046_v44 = vld [vmem:[%s3347_s27 + $0x70] sm:$0xff]  ;;  %v997_v46 = vld [vmem:[#allocation2 + $0x100] sm:$0xff] }
 0x23a   : > { %1267 = vmatpush1.bf16.msra.mxu0 %v2326_v56  ;;  %2090 = vmatpush1.bf16.msra.mxu1 %v2326_v56  ;;  %v1063_v8 = vld [vmem:[%s3347_s27 + $0xf8] sm:$0xff]  ;;  %v1062_v45 = vld [vmem:[%s3347_s27 + $0xf0] sm:$0xff]  ;;  %v966_v47 = vld [vmem:[#allocation2 + $0x8] sm:$0xff] }
 0x23b   : > { %1268 = vmatprep.subr.bf16.mxu0 %v2327_v57  ;;  %2075 = vmatprep.subr.bf16.mxu1 %v2327_v57  ;;  %v998_v48 = vld [vmem:[#allocation2 + $0x108] sm:$0xff]  ;;  %v967_v51 = vld [vmem:[#allocation2 + $0x10] sm:$0xff]  ;;  %v968_v57 = vld [vmem:[#allocation2 + $0x18] sm:$0xff] }
 0x23c   : > { %v999_v52 = vld [vmem:[#allocation2 + $0x110] sm:$0xff]  ;;  %v1000_v58 = vld [vmem:[#allocation2 + $0x118] sm:$0xff] }
 0x23e   : > { %1269 = vmatpush1.bf16.msra.mxu0 %v2329_v60  ;;  %2091 = vmatpush1.bf16.msra.mxu1 %v2329_v60 }
 0x23f   : > { %1270 = vmatprep.subr.bf16.mxu0 %v2330_v61  ;;  %2076 = vmatprep.subr.bf16.mxu1 %v2330_v61 }
 0x242   : > { %1271 = vmatpush1.bf16.msra.mxu0 %v2332_v62  ;;  %2092 = vmatpush1.bf16.msra.mxu1 %v2332_v62 }
 0x243   : > { %1272 = vmatprep.subr.bf16.mxu0 %v2333_v63  ;;  %2077 = vmatprep.subr.bf16.mxu1 %v2333_v63 }
 0x246   : > { %1273 = vmatpush1.bf16.msra.mxu0 %v2335_v0  ;;  %2093 = vmatpush1.bf16.msra.mxu1 %v2335_v0 }
 0x247   : > { %1274 = vmatprep.subr.bf16.mxu0 %v2336_v1  ;;  %2078 = vmatprep.subr.bf16.mxu1 %v2336_v1 }
 0x24a   : > { %1275 = vmatpush1.bf16.msra.mxu0 %v2338_v2  ;;  %2094 = vmatpush1.bf16.msra.mxu1 %v2338_v2 }
 0x24b   : > { %1276 = vmatprep.subr.bf16.mxu0 %v2339_v4  ;;  %2079 = vmatprep.subr.bf16.mxu1 %v2339_v4 }
 0x24e   : > { %1277 = vmatpush1.bf16.msra.mxu0 %v2341_v5  ;;  %2095 = vmatpush1.bf16.msra.mxu1 %v2341_v5 }
 0x24f   : > { %1278 = vmatprep.subr.bf16.mxu0 %v2342_v6  ;;  %2080 = vmatprep.subr.bf16.mxu1 %v2342_v6  ;;  %v969_v6 = vld [vmem:[#allocation2 + $0x20] sm:$0xff] }
 0x252   : > { %1279 = vmatpush1.bf16.msra.mxu0 %v2344_v7  ;;  %2096 = vmatpush1.bf16.msra.mxu1 %v2344_v7  ;;  %v1001_v7 = vld [vmem:[#allocation2 + $0x120] sm:$0xff] }
 0x253   : > { %1280 = vmatprep.subr.bf16.mxu0 %v2345_v9  ;;  %2081 = vmatprep.subr.bf16.mxu1 %v2345_v9  ;;  %v970_v9 = vld [vmem:[#allocation2 + $0x28] sm:$0xff] }
 0x256   : > { %1281 = vmatpush1.bf16.msra.mxu0 %v2347_v10  ;;  %2097 = vmatpush1.bf16.msra.mxu1 %v2347_v10  ;;  %v1002_v10 = vld [vmem:[#allocation2 + $0x128] sm:$0xff] }
 0x257   : > { %1282 = vmatprep.subr.bf16.mxu0 %v2348_v11  ;;  %2082 = vmatprep.subr.bf16.mxu1 %v2348_v11 }
 0x25a   : > { %1283 = vmatpush1.bf16.msra.mxu0 %v2350_v12  ;;  %2098 = vmatpush1.bf16.msra.mxu1 %v2350_v12 }
 0x25b   : > { %1284 = vmatprep.subr.bf16.mxu0 %v2351_v13  ;;  %2083 = vmatprep.subr.bf16.mxu1 %v2351_v13  ;;  %v971_v13 = vld [vmem:[#allocation2 + $0x30] sm:$0xff] }
 0x25e   : > { %1285 = vmatpush1.bf16.msra.mxu0 %v2353_v14  ;;  %2099 = vmatpush1.bf16.msra.mxu1 %v2353_v14  ;;  %v1003_v14 = vld [vmem:[#allocation2 + $0x130] sm:$0xff] }
 0x25f   : > { %1286 = vmatprep.subr.bf16.mxu0 %v2354_v15  ;;  %2084 = vmatprep.subr.bf16.mxu1 %v2354_v15 }
 0x262   : > { %1287 = vmatpush1.bf16.msra.mxu0 %v2356_v16  ;;  %2100 = vmatpush1.bf16.msra.mxu1 %v2356_v16 }
 0x265   : > { %1289 = vmatmul.mubr.bf16.vlgmr.msra.gmra.mrb[0].mxu0 %v1032_v17  ;;  %1369 = vmatmul.mubr.bf16.vlgmr.msra.gmra.mrb[0].mxu1 %v1048_v18 }
 0x266   : > { %1298 = vmatprep.mubr.bf16.mxu0 %v1035_v19  ;;  %1378 = vmatprep.mubr.bf16.mxu1 %v1051_v20  ;;  %v972_v19 = vld [vmem:[#allocation2 + $0x38] sm:$0xff] }
 0x267   : > { %v1004_v20 = vld [vmem:[#allocation2 + $0x138] sm:$0xff] }
 0x26d   : > { %1299 = vmatmul.mubr.bf16.gmra.mrb[4].mxu0 %v1034_v21  ;;  %1379 = vmatmul.mubr.bf16.gmra.mrb[4].mxu1 %v1050_v22 }
 0x26e   : > { %1308 = vmatprep.mubr.bf16.mxu0 %v1037_v23  ;;  %1388 = vmatprep.mubr.bf16.mxu1 %v1053_v24 }
 0x275   : > { %1309 = vmatmul.mubr.bf16.gmra.mrb[8].mxu0 %v1036_v25  ;;  %1389 = vmatmul.mubr.bf16.gmra.mrb[8].mxu1 %v1052_v26 }
 0x276   : > { %1318 = vmatprep.mubr.bf16.mxu0 %v1039_v27  ;;  %1398 = vmatprep.mubr.bf16.mxu1 %v1055_v28 }
 0x27d   : > { %1319 = vmatmul.mubr.bf16.gmra.mrb[12].mxu0 %v1038_v29  ;;  %1399 = vmatmul.mubr.bf16.gmra.mrb[12].mxu1 %v1054_v30 }
 0x27e   : > { %1328 = vmatprep.mubr.bf16.mxu0 %v1041_v31  ;;  %1408 = vmatprep.mubr.bf16.mxu1 %v1057_v32  ;;  %v973_v31 = vld [vmem:[#allocation2 + $0x40] sm:$0xff] }
 0x27f   : > { %v1005_v32 = vld [vmem:[#allocation2 + $0x140] sm:$0xff] }
 0x285   : > { %1329 = vmatmul.mubr.bf16.gmra.mrb[16].mxu0 %v1040_v33  ;;  %1409 = vmatmul.mubr.bf16.gmra.mrb[16].mxu1 %v1056_v34  ;;  %v974_v33 = vld [vmem:[#allocation2 + $0x48] sm:$0xff] }
 0x286   : > { %1338 = vmatprep.mubr.bf16.mxu0 %v1043_v35  ;;  %1418 = vmatprep.mubr.bf16.mxu1 %v1059_v36  ;;  %v1006_v34 = vld [vmem:[#allocation2 + $0x148] sm:$0xff] }
 0x28d   : > { %1339 = vmatmul.mubr.bf16.gmra.mrb[20].mxu0 %v1042_v37  ;;  %1419 = vmatmul.mubr.bf16.gmra.mrb[20].mxu1 %v1058_v38  ;;  %v975_v37 = vld [vmem:[#allocation2 + $0x50] sm:$0xff] }
 0x28e   : > { %1348 = vmatprep.mubr.bf16.mxu0 %v1045_v39  ;;  %1428 = vmatprep.mubr.bf16.mxu1 %v1061_v40  ;;  %v1007_v38 = vld [vmem:[#allocation2 + $0x150] sm:$0xff] }
 0x295   : > { %1349 = vmatmul.mubr.bf16.gmra.mrb[24].mxu0 %v1044_v41  ;;  %1429 = vmatmul.mubr.bf16.gmra.mrb[24].mxu1 %v1060_v42 }
 0x296   : > { %1358 = vmatprep.mubr.bf16.mxu0 %v1047_v43  ;;  %1438 = vmatprep.mubr.bf16.mxu1 %v1063_v8  ;;  %v976_v43 = vld [vmem:[#allocation2 + $0x58] sm:$0xff] }
 0x297   : > { %v1008_v8 = vld [vmem:[#allocation2 + $0x158] sm:$0xff] }
 0x29d   : > { %1359 = vmatmul.mubr.bf16.gmra.mrb[28].mxu0 %v1046_v44  ;;  %1439 = vmatmul.mubr.bf16.gmra.mrb[28].mxu1 %v1062_v45 }
 0x338   : > { %v1290_v49 = vpop.f32.mrb[0].mxu0  ;;  %v1370_v50 = vpop.f32.mrb[0].mxu1 }
 0x339   : > { %v1449_v53 = vadd.f32 %v1290_v49, %v965_v3  ;;  %v1481_v54 = vadd.f32 %v1370_v50, %v997_v46  ;;  %v1292_v55 = vpop.f32.mrb[1].mxu0  ;;  %v1372_v56 = vpop.f32.mrb[1].mxu1 }
 0x33a   : > { %v1450_v59 = vadd.f32 %v1292_v55, %v966_v47  ;;  %v1482_v60 = vadd.f32 %v1372_v56, %v998_v48  ;;  %v1294_v61 = vpop.f32.mrb[2].mxu0  ;;  %v1374_v62 = vpop.f32.mrb[2].mxu1  ;;  %v978_v55 = vld [vmem:[#allocation2 + $0x68] sm:$0xff] }
 0x33b   : > { %1513 = vst [vmem:[#allocation2] sm:$0xff] %v1449_v53  ;;  %1545 = vst [vmem:[#allocation2 + $0x100] sm:$0xff] %v1481_v54  ;;  %v1451_v63 = vadd.f32 %v1294_v61, %v967_v51  ;;  %v1483_v0 = vadd.f32 %v1374_v62, %v999_v52  ;;  %v1296_v1 = vpop.f32.mrb[3].mxu0  ;;  %v1376_v2 = vpop.f32.mrb[3].mxu1  ;;  %v977_v53 = vld [vmem:[#allocation2 + $0x60] sm:$0xff]  ;;  %v1010_v56 = vld [vmem:[#allocation2 + $0x168] sm:$0xff] }
 0x33c   : > { %1514 = vst [vmem:[#allocation2 + $0x8] sm:$0xff] %v1450_v59  ;;  %1546 = vst [vmem:[#allocation2 + $0x108] sm:$0xff] %v1482_v60  ;;  %v1452_v4 = vadd.f32 %v1296_v1, %v968_v57  ;;  %v1484_v5 = vadd.f32 %v1376_v2, %v1000_v58  ;;  %v1009_v54 = vld [vmem:[#allocation2 + $0x160] sm:$0xff]  ;;  %v979_v59 = vld [vmem:[#allocation2 + $0x70] sm:$0xff] }
 0x33d   : > { %1515 = vst [vmem:[#allocation2 + $0x10] sm:$0xff] %v1451_v63  ;;  %1547 = vst [vmem:[#allocation2 + $0x110] sm:$0xff] %v1483_v0  ;;  %v1011_v60 = vld [vmem:[#allocation2 + $0x170] sm:$0xff]  ;;  %v980_v1 = vld [vmem:[#allocation2 + $0x78] sm:$0xff] }
 0x33e   : > { %1516 = vst [vmem:[#allocation2 + $0x18] sm:$0xff] %v1452_v4  ;;  %1548 = vst [vmem:[#allocation2 + $0x118] sm:$0xff] %v1484_v5  ;;  %v1012_v2 = vld [vmem:[#allocation2 + $0x178] sm:$0xff] }
 0x340   : > { %v1300_v11 = vpop.f32.mrb[4].mxu0  ;;  %v1380_v12 = vpop.f32.mrb[4].mxu1 }
 0x341   : > { %v1453_v15 = vadd.f32 %v1300_v11, %v969_v6  ;;  %v1485_v16 = vadd.f32 %v1380_v12, %v1001_v7  ;;  %v1302_v17 = vpop.f32.mrb[5].mxu0  ;;  %v1382_v18 = vpop.f32.mrb[5].mxu1 }
 0x342   : > { %v1454_v21 = vadd.f32 %v1302_v17, %v970_v9  ;;  %v1486_v22 = vadd.f32 %v1382_v18, %v1002_v10  ;;  %v1304_v23 = vpop.f32.mrb[6].mxu0  ;;  %v1384_v24 = vpop.f32.mrb[6].mxu1  ;;  %v982_v17 = vld [vmem:[#allocation2 + $0x88] sm:$0xff] }
 0x343   : > { %1517 = vst [vmem:[#allocation2 + $0x20] sm:$0xff] %v1453_v15  ;;  %1549 = vst [vmem:[#allocation2 + $0x120] sm:$0xff] %v1485_v16  ;;  %v1455_v25 = vadd.f32 %v1304_v23, %v971_v13  ;;  %v1487_v26 = vadd.f32 %v1384_v24, %v1003_v14  ;;  %v1306_v27 = vpop.f32.mrb[7].mxu0  ;;  %v1386_v28 = vpop.f32.mrb[7].mxu1  ;;  %v981_v15 = vld [vmem:[#allocation2 + $0x80] sm:$0xff]  ;;  %v1014_v18 = vld [vmem:[#allocation2 + $0x188] sm:$0xff] }
 0x344   : > { %1518 = vst [vmem:[#allocation2 + $0x28] sm:$0xff] %v1454_v21  ;;  %1550 = vst [vmem:[#allocation2 + $0x128] sm:$0xff] %v1486_v22  ;;  %v1456_v29 = vadd.f32 %v1306_v27, %v972_v19  ;;  %v1488_v30 = vadd.f32 %v1386_v28, %v1004_v20  ;;  %v1013_v16 = vld [vmem:[#allocation2 + $0x180] sm:$0xff]  ;;  %v983_v21 = vld [vmem:[#allocation2 + $0x90] sm:$0xff] }
 0x345   : > { %1519 = vst [vmem:[#allocation2 + $0x30] sm:$0xff] %v1455_v25  ;;  %1551 = vst [vmem:[#allocation2 + $0x130] sm:$0xff] %v1487_v26  ;;  %v1015_v22 = vld [vmem:[#allocation2 + $0x190] sm:$0xff]  ;;  %v984_v27 = vld [vmem:[#allocation2 + $0x98] sm:$0xff] }
 0x346   : > { %1520 = vst [vmem:[#allocation2 + $0x38] sm:$0xff] %v1456_v29  ;;  %1552 = vst [vmem:[#allocation2 + $0x138] sm:$0xff] %v1488_v30  ;;  %v1016_v28 = vld [vmem:[#allocation2 + $0x198] sm:$0xff] }
 0x348   : > { %v1310_v35 = vpop.f32.mrb[8].mxu0  ;;  %v1390_v36 = vpop.f32.mrb[8].mxu1 }
 0x349   : > { %v1457_v39 = vadd.f32 %v1310_v35, %v973_v31  ;;  %v1489_v40 = vadd.f32 %v1390_v36, %v1005_v32  ;;  %v1312_v41 = vpop.f32.mrb[9].mxu0  ;;  %v1392_v42 = vpop.f32.mrb[9].mxu1 }
 0x34a   : > { %v1458_v44 = vadd.f32 %v1312_v41, %v974_v33  ;;  %v1490_v45 = vadd.f32 %v1392_v42, %v1006_v34  ;;  %v1314_v3 = vpop.f32.mrb[10].mxu0  ;;  %v1394_v46 = vpop.f32.mrb[10].mxu1  ;;  %v986_v41 = vld [vmem:[#allocation2 + $0xa8] sm:$0xff] }
 0x34b   : > { %1521 = vst [vmem:[#allocation2 + $0x40] sm:$0xff] %v1457_v39  ;;  %1553 = vst [vmem:[#allocation2 + $0x140] sm:$0xff] %v1489_v40  ;;  %v1459_v47 = vadd.f32 %v1314_v3, %v975_v37  ;;  %v1491_v48 = vadd.f32 %v1394_v46, %v1007_v38  ;;  %v1316_v49 = vpop.f32.mrb[11].mxu0  ;;  %v1396_v50 = vpop.f32.mrb[11].mxu1  ;;  %v985_v39 = vld [vmem:[#allocation2 + $0xa0] sm:$0xff]  ;;  %v1018_v42 = vld [vmem:[#allocation2 + $0x1a8] sm:$0xff] }
 0x34c   : > { %1522 = vst [vmem:[#allocation2 + $0x48] sm:$0xff] %v1458_v44  ;;  %1554 = vst [vmem:[#allocation2 + $0x148] sm:$0xff] %v1490_v45  ;;  %v1460_v51 = vadd.f32 %v1316_v49, %v976_v43  ;;  %v1492_v52 = vadd.f32 %v1396_v50, %v1008_v8  ;;  %v1017_v40 = vld [vmem:[#allocation2 + $0x1a0] sm:$0xff]  ;;  %v987_v44 = vld [vmem:[#allocation2 + $0xb0] sm:$0xff] }
 0x34d   : > { %1523 = vst [vmem:[#allocation2 + $0x50] sm:$0xff] %v1459_v47  ;;  %1555 = vst [vmem:[#allocation2 + $0x150] sm:$0xff] %v1491_v48  ;;  %v1019_v45 = vld [vmem:[#allocation2 + $0x1b0] sm:$0xff]  ;;  %v988_v49 = vld [vmem:[#allocation2 + $0xb8] sm:$0xff] }
 0x34e   : > { %1524 = vst [vmem:[#allocation2 + $0x58] sm:$0xff] %v1460_v51  ;;  %1556 = vst [vmem:[#allocation2 + $0x158] sm:$0xff] %v1492_v52  ;;  %v1020_v50 = vld [vmem:[#allocation2 + $0x1b8] sm:$0xff] }
 0x350   : > { %v1320_v57 = vpop.f32.mrb[12].mxu0  ;;  %v1400_v58 = vpop.f32.mrb[12].mxu1 }
 0x351   : > { %v1461_v61 = vadd.f32 %v1320_v57, %v977_v53  ;;  %v1493_v62 = vadd.f32 %v1400_v58, %v1009_v54  ;;  %v1322_v63 = vpop.f32.mrb[13].mxu0  ;;  %v1402_v0 = vpop.f32.mrb[13].mxu1 }
 0x352   : > { %v1462_v4 = vadd.f32 %v1322_v63, %v978_v55  ;;  %v1494_v5 = vadd.f32 %v1402_v0, %v1010_v56  ;;  %v1324_v6 = vpop.f32.mrb[14].mxu0  ;;  %v1404_v7 = vpop.f32.mrb[14].mxu1  ;;  %v990_v63 = vld [vmem:[#allocation2 + $0xc8] sm:$0xff] }
 0x353   : > { %1525 = vst [vmem:[#allocation2 + $0x60] sm:$0xff] %v1461_v61  ;;  %1557 = vst [vmem:[#allocation2 + $0x160] sm:$0xff] %v1493_v62  ;;  %v1463_v9 = vadd.f32 %v1324_v6, %v979_v59  ;;  %v1495_v10 = vadd.f32 %v1404_v7, %v1011_v60  ;;  %v1326_v11 = vpop.f32.mrb[15].mxu0  ;;  %v1406_v12 = vpop.f32.mrb[15].mxu1  ;;  %v989_v61 = vld [vmem:[#allocation2 + $0xc0] sm:$0xff]  ;;  %v1022_v0 = vld [vmem:[#allocation2 + $0x1c8] sm:$0xff] }
 0x354   : > { %1526 = vst [vmem:[#allocation2 + $0x68] sm:$0xff] %v1462_v4  ;;  %1558 = vst [vmem:[#allocation2 + $0x168] sm:$0xff] %v1494_v5  ;;  %v1464_v13 = vadd.f32 %v1326_v11, %v980_v1  ;;  %v1496_v14 = vadd.f32 %v1406_v12, %v1012_v2  ;;  %v1021_v62 = vld [vmem:[#allocation2 + $0x1c0] sm:$0xff]  ;;  %v991_v4 = vld [vmem:[#allocation2 + $0xd0] sm:$0xff] }
 0x355   : > { %1527 = vst [vmem:[#allocation2 + $0x70] sm:$0xff] %v1463_v9  ;;  %1559 = vst [vmem:[#allocation2 + $0x170] sm:$0xff] %v1495_v10  ;;  %v1023_v5 = vld [vmem:[#allocation2 + $0x1d0] sm:$0xff]  ;;  %v992_v11 = vld [vmem:[#allocation2 + $0xd8] sm:$0xff] }
 0x356   : > { %1528 = vst [vmem:[#allocation2 + $0x78] sm:$0xff] %v1464_v13  ;;  %1560 = vst [vmem:[#allocation2 + $0x178] sm:$0xff] %v1496_v14  ;;  %v1024_v12 = vld [vmem:[#allocation2 + $0x1d8] sm:$0xff] }
 0x358   : > { %v1330_v19 = vpop.f32.mrb[16].mxu0  ;;  %v1410_v20 = vpop.f32.mrb[16].mxu1 }
 0x359   : > { %v1465_v23 = vadd.f32 %v1330_v19, %v981_v15  ;;  %v1497_v24 = vadd.f32 %v1410_v20, %v1013_v16  ;;  %v1332_v25 = vpop.f32.mrb[17].mxu0  ;;  %v1412_v26 = vpop.f32.mrb[17].mxu1 }
 0x35a   : > { %v1466_v29 = vadd.f32 %v1332_v25, %v982_v17  ;;  %v1498_v30 = vadd.f32 %v1412_v26, %v1014_v18  ;;  %v1334_v31 = vpop.f32.mrb[18].mxu0  ;;  %v1414_v32 = vpop.f32.mrb[18].mxu1  ;;  %v994_v25 = vld [vmem:[#allocation2 + $0xe8] sm:$0xff] }
 0x35b   : > { %1529 = vst [vmem:[#allocation2 + $0x80] sm:$0xff] %v1465_v23  ;;  %1561 = vst [vmem:[#allocation2 + $0x180] sm:$0xff] %v1497_v24  ;;  %v1467_v33 = vadd.f32 %v1334_v31, %v983_v21  ;;  %v1499_v34 = vadd.f32 %v1414_v32, %v1015_v22  ;;  %v1336_v35 = vpop.f32.mrb[19].mxu0  ;;  %v1416_v36 = vpop.f32.mrb[19].mxu1  ;;  %v993_v23 = vld [vmem:[#allocation2 + $0xe0] sm:$0xff]  ;;  %v1026_v26 = vld [vmem:[#allocation2 + $0x1e8] sm:$0xff] }
 0x35c   : > { %1530 = vst [vmem:[#allocation2 + $0x88] sm:$0xff] %v1466_v29  ;;  %1562 = vst [vmem:[#allocation2 + $0x188] sm:$0xff] %v1498_v30  ;;  %v1468_v37 = vadd.f32 %v1336_v35, %v984_v27  ;;  %v1500_v38 = vadd.f32 %v1416_v36, %v1016_v28  ;;  %v1025_v24 = vld [vmem:[#allocation2 + $0x1e0] sm:$0xff]  ;;  %v995_v29 = vld [vmem:[#allocation2 + $0xf0] sm:$0xff] }
 0x35d   : > { %1531 = vst [vmem:[#allocation2 + $0x90] sm:$0xff] %v1467_v33  ;;  %1563 = vst [vmem:[#allocation2 + $0x190] sm:$0xff] %v1499_v34  ;;  %v1027_v30 = vld [vmem:[#allocation2 + $0x1f0] sm:$0xff]  ;;  %v996_v35 = vld [vmem:[#allocation2 + $0xf8] sm:$0xff] }
 0x35e   : > { %1532 = vst [vmem:[#allocation2 + $0x98] sm:$0xff] %v1468_v37  ;;  %1564 = vst [vmem:[#allocation2 + $0x198] sm:$0xff] %v1500_v38  ;;  %v1028_v36 = vld [vmem:[#allocation2 + $0x1f8] sm:$0xff] }
 0x360   : > { %v1340_v43 = vpop.f32.mrb[20].mxu0  ;;  %v1420_v8 = vpop.f32.mrb[20].mxu1 }
 0x361   : > { %v1469_v3 = vadd.f32 %v1340_v43, %v985_v39  ;;  %v1501_v46 = vadd.f32 %v1420_v8, %v1017_v40  ;;  %v1342_v47 = vpop.f32.mrb[21].mxu0  ;;  %v1422_v48 = vpop.f32.mrb[21].mxu1 }
 0x362   : > { %v1470_v51 = vadd.f32 %v1342_v47, %v986_v41  ;;  %v1502_v52 = vadd.f32 %v1422_v48, %v1018_v42  ;;  %v1344_v53 = vpop.f32.mrb[22].mxu0  ;;  %v1424_v54 = vpop.f32.mrb[22].mxu1  ;;  %v1581_v48 = vld [vmem:[#allocation2] sm:$0xff] (!%p2039_p7) }
 0x363   : > { %1533 = vst [vmem:[#allocation2 + $0xa0] sm:$0xff] %v1469_v3  ;;  %1565 = vst [vmem:[#allocation2 + $0x1a0] sm:$0xff] %v1501_v46  ;;  %v1471_v55 = vadd.f32 %v1344_v53, %v987_v44  ;;  %v1503_v56 = vadd.f32 %v1424_v54, %v1019_v45  ;;  %v1346_v57 = vpop.f32.mrb[23].mxu0  ;;  %v1426_v58 = vpop.f32.mrb[23].mxu1  ;;  %v1647_v3 = vlaneseq (!%p2039_p7)  ;;  %v1645_v46 = vld [vmem:[%s408_s15] sm:$0x3] (!%p2039_p7) }
 0x364   : > { %1534 = vst [vmem:[#allocation2 + $0xa8] sm:$0xff] %v1470_v51  ;;  %1566 = vst [vmem:[#allocation2 + $0x1a8] sm:$0xff] %v1502_v52  ;;  %v1472_v59 = vadd.f32 %v1346_v57, %v988_v49  ;;  %v1504_v60 = vadd.f32 %v1426_v58, %v1020_v50  ;;  %v1582_v49 = vld [vmem:[#allocation2 + $0x8] sm:$0xff] (!%p2039_p7)  ;;  %v1583_v50 = vld [vmem:[#allocation2 + $0x10] sm:$0xff] (!%p2039_p7) }
 0x365   : > { %1535 = vst [vmem:[#allocation2 + $0xb0] sm:$0xff] %v1471_v55  ;;  %1567 = vst [vmem:[#allocation2 + $0x1b0] sm:$0xff] %v1503_v56  ;;  %v1648_v47 = vshrl.u32 (!%p2039_p7), %v1647_v3, 7  ;;  %v1584_v51 = vld [vmem:[#allocation2 + $0x18] sm:$0xff] (!%p2039_p7)  ;;  %v1585_v54 = vld [vmem:[#allocation2 + $0x20] sm:$0xff] (!%p2039_p7) }
 0x366   : > { %1536 = vst [vmem:[#allocation2 + $0xb8] sm:$0xff] %v1472_v59  ;;  %1568 = vst [vmem:[#allocation2 + $0x1b8] sm:$0xff] %v1504_v60  ;;  %v1586_v55 = vld [vmem:[#allocation2 + $0x28] sm:$0xff] (!%p2039_p7)  ;;  %v1587_v56 = vld [vmem:[#allocation2 + $0x30] sm:$0xff] (!%p2039_p7) }
 0x367   : > { %v1649_v52 = vsub.s32 (!%p2039_p7), 0, %v1648_v47  ;;  %v1653_v53 = vsub.s32 (!%p2039_p7), 1, %v1648_v47  ;;  %v1588_v57 = vld [vmem:[#allocation2 + $0x38] sm:$0xff] (!%p2039_p7)  ;;  %v1589_v58 = vld [vmem:[#allocation2 + $0x40] sm:$0xff] (!%p2039_p7)  ;;  %v1590_v59 = vld [vmem:[#allocation2 + $0x48] sm:$0xff] (!%p2039_p7) }
 0x368   : > { %v1350_v1 = vpop.f32.mrb[24].mxu0  ;;  %v1430_v2 = vpop.f32.mrb[24].mxu1  ;;  %v1591_v60 = vld [vmem:[#allocation2 + $0x50] sm:$0xff] (!%p2039_p7)  ;;  %v1618_v3 = vld [vmem:[#allocation2 + $0x128] sm:$0xff] (!%p2039_p7) }
 0x369   : > { %v1473_v6 = vadd.f32 %v1350_v1, %v989_v61  ;;  %v1505_v7 = vadd.f32 %v1430_v2, %v1021_v62  ;;  %v1352_v9 = vpop.f32.mrb[25].mxu0  ;;  %v1432_v10 = vpop.f32.mrb[25].mxu1  ;;  %v1592_v61 = vld [vmem:[#allocation2 + $0x58] sm:$0xff] (!%p2039_p7)  ;;  %v3406_v62 = vrot.slane (!%p2039_p7), %v1645_v46, %v1649_v52  ;;  %v1594_v1 = vld [vmem:[#allocation2 + $0x68] sm:$0xff] (!%p2039_p7)  ;;  %v1595_v2 = vld [vmem:[#allocation2 + $0x70] sm:$0xff] (!%p2039_p7) }
 0x36a   : > { %v1474_v13 = vadd.f32 %v1352_v9, %v990_v63  ;;  %v1506_v14 = vadd.f32 %v1432_v10, %v1022_v0  ;;  %v1354_v15 = vpop.f32.mrb[26].mxu0  ;;  %v1434_v16 = vpop.f32.mrb[26].mxu1  ;;  %v3408_v63 = vrot.slane (!%p2039_p7), %v1645_v46, %v1653_v53  ;;  %v1593_v0 = vld [vmem:[#allocation2 + $0x60] sm:$0xff] (!%p2039_p7)  ;;  %v1600_v9 = vld [vmem:[#allocation2 + $0x98] sm:$0xff] (!%p2039_p7) }
 0x36b   : > { %1537 = vst [vmem:[#allocation2 + $0xc0] sm:$0xff] %v1473_v6  ;;  %1569 = vst [vmem:[#allocation2 + $0x1c0] sm:$0xff] %v1505_v7  ;;  %v1475_v17 = vadd.f32 %v1354_v15, %v991_v4  ;;  %v1507_v18 = vadd.f32 %v1434_v16, %v1023_v5  ;;  %v1356_v19 = vpop.f32.mrb[27].mxu0  ;;  %v1436_v20 = vpop.f32.mrb[27].mxu1  ;;  %v1596_v4 = vld [vmem:[#allocation2 + $0x78] sm:$0xff] (!%p2039_p7)  ;;  %v1597_v5 = vld [vmem:[#allocation2 + $0x80] sm:$0xff] (!%p2039_p7)  ;;  %v1657_v10 = vadd.f32 (!%p2039_p7), %v3406_v62, %v1581_v48 }
 0x36c   : > { %1538 = vst [vmem:[#allocation2 + $0xc8] sm:$0xff] %v1474_v13  ;;  %1570 = vst [vmem:[#allocation2 + $0x1c8] sm:$0xff] %v1506_v14  ;;  %v1476_v21 = vadd.f32 %v1356_v19, %v992_v11  ;;  %v1508_v22 = vadd.f32 %v1436_v20, %v1024_v12  ;;  %v1598_v6 = vld [vmem:[#allocation2 + $0x88] sm:$0xff] (!%p2039_p7)  ;;  %v1599_v7 = vld [vmem:[#allocation2 + $0x90] sm:$0xff] (!%p2039_p7)  ;;  %v1658_v11 = vadd.f32 (!%p2039_p7), %v3408_v63, %v1582_v49 }
 0x36d   : > { %1539 = vst [vmem:[#allocation2 + $0xd0] sm:$0xff] %v1475_v17  ;;  %1571 = vst [vmem:[#allocation2 + $0x1d0] sm:$0xff] %v1507_v18  ;;  %v1659_v12 = vadd.f32 (!%p2039_p7), %v3406_v62, %v1583_v50  ;;  %v1660_v13 = vadd.f32 (!%p2039_p7), %v3408_v63, %v1584_v51  ;;  %v1601_v14 = vld [vmem:[#allocation2 + $0xa0] sm:$0xff] (!%p2039_p7)  ;;  %v1602_v15 = vld [vmem:[#allocation2 + $0xa8] sm:$0xff] (!%p2039_p7)  ;;  %v1661_v18 = vadd.f32 (!%p2039_p7), %v3406_v62, %v1585_v54 }
 0x36e   : > { %1540 = vst [vmem:[#allocation2 + $0xd8] sm:$0xff] %v1476_v21  ;;  %1572 = vst [vmem:[#allocation2 + $0x1d8] sm:$0xff] %v1508_v22  ;;  %v1603_v16 = vld [vmem:[#allocation2 + $0xb0] sm:$0xff] (!%p2039_p7)  ;;  %v1604_v17 = vld [vmem:[#allocation2 + $0xb8] sm:$0xff] (!%p2039_p7)  ;;  %v1662_v19 = vadd.f32 (!%p2039_p7), %v3408_v63, %v1586_v55  ;;  %v1663_v20 = vadd.f32 (!%p2039_p7), %v3406_v62, %v1587_v56  ;;  %v1664_v21 = vadd.f32 (!%p2039_p7), %v3408_v63, %v1588_v57 }
 0x36f   : > { %1721 = vst [vmem:[%s3093_s6] sm:$0xff] (!%p2039_p7), %v1657_v10  ;;  %1722 = vst [vmem:[%s3093_s6 + $0x8] sm:$0xff] (!%p2039_p7), %v1658_v11  ;;  %v1677_v46 = vadd.f32 (!%p2039_p7), %v3406_v62, %v1601_v14  ;;  %v1678_v47 = vadd.f32 (!%p2039_p7), %v3408_v63, %v1602_v15  ;;  %v1679_v48 = vadd.f32 (!%p2039_p7), %v3406_v62, %v1603_v16  ;;  %v1619_v50 = vld [vmem:[#allocation2 + $0x130] sm:$0xff] (!%p2039_p7)  ;;  %v1620_v51 = vld [vmem:[#allocation2 + $0x138] sm:$0xff] (!%p2039_p7) }
 0x370   : > { %v1360_v27 = vpop.f32.mrb[28].mxu0  ;;  %v1440_v28 = vpop.f32.mrb[28].mxu1  ;;  %1580 = sbr.rel (%p2039_p7) target bundleno = 916 (0x394), region = 64  ;;  %1723 = vst [vmem:[%s3093_s6 + $0x10] sm:$0xff] (!%p2039_p7), %v1659_v12  ;;  %1724 = vst [vmem:[%s3093_s6 + $0x18] sm:$0xff] (!%p2039_p7), %v1660_v13  ;;  %v1680_v49 = vadd.f32 (!%p2039_p7), %v3408_v63, %v1604_v17  ;;  %v1621_v52 = vld [vmem:[#allocation2 + $0x140] sm:$0xff] (!%p2039_p7)  ;;  %v1694_v15 = vadd.f32 (!%p2039_p7), %v3408_v63, %v1618_v3  ;;  %v1695_v16 = vadd.f32 (!%p2039_p7), %v3406_v62, %v1619_v50 }
 0x371   : > { %v1477_v31 = vadd.f32 %v1360_v27, %v993_v23  ;;  %v1509_v32 = vadd.f32 %v1440_v28, %v1025_v24  ;;  %v1362_v33 = vpop.f32.mrb[29].mxu0  ;;  %v1442_v34 = vpop.f32.mrb[29].mxu1  ;;  %v1666_v27 = vadd.f32 (!%p2039_p7), %v3408_v63, %v1590_v59  ;;  %v1667_v28 = vadd.f32 (!%p2039_p7), %v3406_v62, %v1591_v60  ;;  %1725 = vst [vmem:[%s3093_s6 + $0x20] sm:$0xff] (!%p2039_p7), %v1661_v18  ;;  %v1622_v57 = vld [vmem:[#allocation2 + $0x148] sm:$0xff] (!%p2039_p7)  ;;  %v1624_v59 = vld [vmem:[#allocation2 + $0x158] sm:$0xff] (!%p2039_p7)  ;;  %v1629_v12 = vld [vmem:[#allocation2 + $0x180] sm:$0xff] (!%p2039_p7) }
 0x372   : > { %v1478_v37 = vadd.f32 %v1362_v33, %v994_v25  ;;  %v1510_v38 = vadd.f32 %v1442_v34, %v1026_v26  ;;  %v1364_v39 = vpop.f32.mrb[30].mxu0  ;;  %v1444_v40 = vpop.f32.mrb[30].mxu1  ;;  %v1605_v22 = vld [vmem:[#allocation2 + $0xc0] sm:$0xff] (!%p2039_p7)  ;;  %v1665_v26 = vadd.f32 (!%p2039_p7), %v3406_v62, %v1589_v58  ;;  %1726 = vst [vmem:[%s3093_s6 + $0x28] sm:$0xff] (!%p2039_p7), %v1662_v19  ;;  %1727 = vst [vmem:[%s3093_s6 + $0x30] sm:$0xff] (!%p2039_p7), %v1663_v20  ;;  %v1623_v58 = vld [vmem:[#allocation2 + $0x150] sm:$0xff] (!%p2039_p7) }
 0x373   : > { %1541 = vst [vmem:[#allocation2 + $0xe0] sm:$0xff] %v1477_v31  ;;  %1573 = vst [vmem:[#allocation2 + $0x1e0] sm:$0xff] %v1509_v32  ;;  %v1479_v41 = vadd.f32 %v1364_v39, %v995_v29  ;;  %v1511_v42 = vadd.f32 %v1444_v40, %v1027_v30  ;;  %v1366_v43 = vpop.f32.mrb[31].mxu0  ;;  %v1446_v8 = vpop.f32.mrb[31].mxu1  ;;  %v1606_v23 = vld [vmem:[#allocation2 + $0xc8] sm:$0xff] (!%p2039_p7)  ;;  %v1668_v29 = vadd.f32 (!%p2039_p7), %v3408_v63, %v1592_v61  ;;  %v1615_v40 = vld [vmem:[#allocation2 + $0x110] sm:$0xff] (!%p2039_p7) }
 0x374   : > { %1542 = vst [vmem:[#allocation2 + $0xe8] sm:$0xff] %v1478_v37  ;;  %1574 = vst [vmem:[#allocation2 + $0x1e8] sm:$0xff] %v1510_v38  ;;  %v1480_v44 = vadd.f32 %v1366_v43, %v996_v35  ;;  %v1512_v45 = vadd.f32 %v1446_v8, %v1028_v36  ;;  %v1607_v24 = vld [vmem:[#allocation2 + $0xd0] sm:$0xff] (!%p2039_p7)  ;;  %v1669_v34 = vadd.f32 (!%p2039_p7), %v3406_v62, %v1593_v0  ;;  %v1613_v38 = vld [vmem:[#allocation2 + $0x100] sm:$0xff] (!%p2039_p7) }
 0x375   : > { %1543 = vst [vmem:[#allocation2 + $0xf0] sm:$0xff] %v1479_v41  ;;  %1575 = vst [vmem:[#allocation2 + $0x1f0] sm:$0xff] %v1511_v42  ;;  %v1608_v25 = vld [vmem:[#allocation2 + $0xd8] sm:$0xff] (!%p2039_p7)  ;;  %v1670_v35 = vadd.f32 (!%p2039_p7), %v3408_v63, %v1594_v1  ;;  %v1671_v36 = vadd.f32 (!%p2039_p7), %v3406_v62, %v1595_v2  ;;  %v1672_v37 = vadd.f32 (!%p2039_p7), %v3408_v63, %v1596_v4  ;;  %v1614_v39 = vld [vmem:[#allocation2 + $0x108] sm:$0xff] (!%p2039_p7) }
 0x376   : > { %1544 = vst [vmem:[#allocation2 + $0xf8] sm:$0xff] %v1480_v44  ;;  %1576 = vst [vmem:[#allocation2 + $0x1f8] sm:$0xff] %v1512_v45  ;;  %v1673_v41 = vadd.f32 (!%p2039_p7), %v3406_v62, %v1597_v5  ;;  %v1674_v42 = vadd.f32 (!%p2039_p7), %v3408_v63, %v1598_v6  ;;  %v1675_v43 = vadd.f32 (!%p2039_p7), %v3406_v62, %v1599_v7  ;;  %v1616_v44 = vld [vmem:[#allocation2 + $0x118] sm:$0xff] (!%p2039_p7)  ;;  %v1617_v45 = vld [vmem:[#allocation2 + $0x120] sm:$0xff] (!%p2039_p7) }
 0x377   : > { %1728 = vst [vmem:[%s3093_s6 + $0x38] sm:$0xff] %v1664_v21  ;;  %1729 = vst [vmem:[%s3093_s6 + $0x40] sm:$0xff] %v1665_v26  ;;  %v1676_v8 = vadd.f32 %v3408_v63, %v1600_v9  ;;  %v1681_v53 = vadd.f32 %v3406_v62, %v1605_v22  ;;  %v1682_v54 = vadd.f32 %v3408_v63, %v1606_v23  ;;  %v1625_v2 = vld [vmem:[#allocation2 + $0x160] sm:$0xff]  ;;  %v1626_v4 = vld [vmem:[#allocation2 + $0x168] sm:$0xff] }
 0x378   : > { %1730 = vst [vmem:[%s3093_s6 + $0x48] sm:$0xff] %v1666_v27  ;;  %1731 = vst [vmem:[%s3093_s6 + $0x50] sm:$0xff] %v1667_v28  ;;  %v1683_v55 = vadd.f32 %v3406_v62, %v1607_v24  ;;  %v1684_v56 = vadd.f32 %v3408_v63, %v1608_v25  ;;  %v1627_v5 = vld [vmem:[#allocation2 + $0x170] sm:$0xff]  ;;  %v1689_v6 = vadd.f32 %v3406_v62, %v1613_v38  ;;  %v1628_v11 = vld [vmem:[#allocation2 + $0x178] sm:$0xff] }
 0x379   : > { %1732 = vst [vmem:[%s3093_s6 + $0x58] sm:$0xff] %v1668_v29  ;;  %1733 = vst [vmem:[%s3093_s6 + $0x60] sm:$0xff] %v1669_v34  ;;  %v1690_v7 = vadd.f32 %v3408_v63, %v1614_v39  ;;  %v1691_v9 = vadd.f32 %v3406_v62, %v1615_v40  ;;  %v1692_v10 = vadd.f32 %v3408_v63, %v1616_v44  ;;  %v1630_v13 = vld [vmem:[#allocation2 + $0x188] sm:$0xff]  ;;  %v1631_v18 = vld [vmem:[#allocation2 + $0x190] sm:$0xff] }
 0x37a   : > { %v1609_v30 = vld [vmem:[#allocation2 + $0xe0] sm:$0xff]  ;;  %1734 = vst [vmem:[%s3093_s6 + $0x68] sm:$0xff] %v1670_v35  ;;  %1735 = vst [vmem:[%s3093_s6 + $0x70] sm:$0xff] %v1671_v36  ;;  %v1693_v14 = vadd.f32 %v3406_v62, %v1617_v45  ;;  %v1696_v17 = vadd.f32 %v3408_v63, %v1620_v51  ;;  %v1632_v19 = vld [vmem:[#allocation2 + $0x198] sm:$0xff]  ;;  %v1697_v21 = vadd.f32 %v3406_v62, %v1621_v52 }
 0x37b   : > { %v1610_v31 = vld [vmem:[#allocation2 + $0xe8] sm:$0xff]  ;;  %1736 = vst [vmem:[%s3093_s6 + $0x78] sm:$0xff] %v1672_v37  ;;  %1737 = vst [vmem:[%s3093_s6 + $0x80] sm:$0xff] %v1673_v41  ;;  %v1685_v60 = vadd.f32 %v3406_v62, %v1609_v30  ;;  %v1633_v20 = vld [vmem:[#allocation2 + $0x1a0] sm:$0xff]  ;;  %v1698_v22 = vadd.f32 %v3408_v63, %v1622_v57  ;;  %v1699_v23 = vadd.f32 %v3406_v62, %v1623_v58 }
 0x37c   : > { %v1611_v32 = vld [vmem:[#allocation2 + $0xf0] sm:$0xff]  ;;  %1738 = vst [vmem:[%s3093_s6 + $0x88] sm:$0xff] %v1674_v42  ;;  %1739 = vst [vmem:[%s3093_s6 + $0x90] sm:$0xff] %v1675_v43  ;;  %v1686_v61 = vadd.f32 %v3408_v63, %v1610_v31  ;;  %v1700_v24 = vadd.f32 %v3408_v63, %v1624_v59  ;;  %v1634_v25 = vld [vmem:[#allocation2 + $0x1a8] sm:$0xff]  ;;  %v1701_v28 = vadd.f32 %v3406_v62, %v1625_v2 }
 0x37d   : > { %v1612_v33 = vld [vmem:[#allocation2 + $0xf8] sm:$0xff]  ;;  %1740 = vst [vmem:[%s3093_s6 + $0x98] sm:$0xff] %v1676_v8  ;;  %1741 = vst [vmem:[%s3093_s6 + $0xa0] sm:$0xff] %v1677_v46  ;;  %v1687_v0 = vadd.f32 %v3406_v62, %v1611_v32  ;;  %v1635_v26 = vld [vmem:[#allocation2 + $0x1b0] sm:$0xff]  ;;  %v1702_v29 = vadd.f32 %v3408_v63, %v1626_v4  ;;  %v1703_v30 = vadd.f32 %v3406_v62, %v1627_v5 }
 0x37e   : > { %1742 = vst [vmem:[%s3093_s6 + $0xa8] sm:$0xff] %v1678_v47  ;;  %1743 = vst [vmem:[%s3093_s6 + $0xb0] sm:$0xff] %v1679_v48  ;;  %v1688_v1 = vadd.f32 %v3408_v63, %v1612_v33  ;;  %v1636_v27 = vld [vmem:[#allocation2 + $0x1b8] sm:$0xff]  ;;  %v1704_v31 = vadd.f32 %v3408_v63, %v1628_v11  ;;  %v1637_v32 = vld [vmem:[#allocation2 + $0x1c0] sm:$0xff]  ;;  %v1705_v35 = vadd.f32 %v3406_v62, %v1629_v12 }
 0x37f   : > { %1744 = vst [vmem:[%s3093_s6 + $0xb8] sm:$0xff] %v1680_v49  ;;  %1745 = vst [vmem:[%s3093_s6 + $0xc0] sm:$0xff] %v1681_v53  ;;  %v1638_v33 = vld [vmem:[#allocation2 + $0x1c8] sm:$0xff]  ;;  %v1639_v34 = vld [vmem:[#allocation2 + $0x1d0] sm:$0xff]  ;;  %v1706_v36 = vadd.f32 %v3408_v63, %v1630_v13  ;;  %v1707_v37 = vadd.f32 %v3406_v62, %v1631_v18  ;;  %v1708_v38 = vadd.f32 %v3408_v63, %v1632_v19 }
 0x380   : > { %1746 = vst [vmem:[%s3093_s6 + $0xc8] sm:$0xff] %v1682_v54  ;;  %1747 = vst [vmem:[%s3093_s6 + $0xd0] sm:$0xff] %v1683_v55  ;;  %v1640_v39 = vld [vmem:[#allocation2 + $0x1d8] sm:$0xff]  ;;  %v1641_v40 = vld [vmem:[#allocation2 + $0x1e0] sm:$0xff]  ;;  %v1709_v42 = vadd.f32 %v3406_v62, %v1633_v20  ;;  %v1710_v43 = vadd.f32 %v3408_v63, %v1634_v25  ;;  %v1711_v8 = vadd.f32 %v3406_v62, %v1635_v26 }
 0x381   : > { %1748 = vst [vmem:[%s3093_s6 + $0xd8] sm:$0xff] %v1684_v56  ;;  %1749 = vst [vmem:[%s3093_s6 + $0xe0] sm:$0xff] %v1685_v60  ;;  %v1642_v41 = vld [vmem:[#allocation2 + $0x1e8] sm:$0xff]  ;;  %v1712_v44 = vadd.f32 %v3408_v63, %v1636_v27  ;;  %v1643_v45 = vld [vmem:[#allocation2 + $0x1f0] sm:$0xff]  ;;  %v1713_v46 = vadd.f32 %v3406_v62, %v1637_v32  ;;  %v1714_v47 = vadd.f32 %v3408_v63, %v1638_v33 }
 0x382   : > { %1750 = vst [vmem:[%s3093_s6 + $0xe8] sm:$0xff] %v1686_v61  ;;  %1751 = vst [vmem:[%s3093_s6 + $0xf0] sm:$0xff] %v1687_v0  ;;  %v1644_v3 = vld [vmem:[#allocation2 + $0x1f8] sm:$0xff]  ;;  %v1715_v48 = vadd.f32 %v3406_v62, %v1639_v34  ;;  %v1716_v49 = vadd.f32 %v3408_v63, %v1640_v39  ;;  %v1717_v50 = vadd.f32 %v3406_v62, %v1641_v40 }
 0x383   : > { %1752 = vst [vmem:[%s3093_s6 + $0xf8] sm:$0xff] %v1688_v1  ;;  %1753 = vst [vmem:[%s3093_s6 + $0x100] sm:$0xff] %v1689_v6  ;;  %v1718_v51 = vadd.f32 %v3408_v63, %v1642_v41  ;;  %v1719_v52 = vadd.f32 %v3406_v62, %v1643_v45  ;;  %v1720_v53 = vadd.f32 %v3408_v63, %v1644_v3 }
 0x384   : > { %1754 = vst [vmem:[%s3093_s6 + $0x108] sm:$0xff] %v1690_v7  ;;  %1755 = vst [vmem:[%s3093_s6 + $0x110] sm:$0xff] %v1691_v9 }
 0x385   : > { %1756 = vst [vmem:[%s3093_s6 + $0x118] sm:$0xff] %v1692_v10  ;;  %1757 = vst [vmem:[%s3093_s6 + $0x120] sm:$0xff] %v1693_v14 }
 0x386   : > { %1758 = vst [vmem:[%s3093_s6 + $0x128] sm:$0xff] %v1694_v15  ;;  %1759 = vst [vmem:[%s3093_s6 + $0x130] sm:$0xff] %v1695_v16 }
 0x387   : > { %1760 = vst [vmem:[%s3093_s6 + $0x138] sm:$0xff] %v1696_v17  ;;  %1761 = vst [vmem:[%s3093_s6 + $0x140] sm:$0xff] %v1697_v21 }
 0x388   : > { %1762 = vst [vmem:[%s3093_s6 + $0x148] sm:$0xff] %v1698_v22  ;;  %1763 = vst [vmem:[%s3093_s6 + $0x150] sm:$0xff] %v1699_v23 }
 0x389   : > { %1764 = vst [vmem:[%s3093_s6 + $0x158] sm:$0xff] %v1700_v24  ;;  %1765 = vst [vmem:[%s3093_s6 + $0x160] sm:$0xff] %v1701_v28 }
 0x38a   : > { %1766 = vst [vmem:[%s3093_s6 + $0x168] sm:$0xff] %v1702_v29  ;;  %1767 = vst [vmem:[%s3093_s6 + $0x170] sm:$0xff] %v1703_v30 }
 0x38b   : > { %1768 = vst [vmem:[%s3093_s6 + $0x178] sm:$0xff] %v1704_v31  ;;  %1769 = vst [vmem:[%s3093_s6 + $0x180] sm:$0xff] %v1705_v35 }
 0x38c   : > { %1770 = vst [vmem:[%s3093_s6 + $0x188] sm:$0xff] %v1706_v36  ;;  %1771 = vst [vmem:[%s3093_s6 + $0x190] sm:$0xff] %v1707_v37 }
 0x38d   : > { %1772 = vst [vmem:[%s3093_s6 + $0x198] sm:$0xff] %v1708_v38  ;;  %1773 = vst [vmem:[%s3093_s6 + $0x1a0] sm:$0xff] %v1709_v42 }
 0x38e   : > { %1774 = vst [vmem:[%s3093_s6 + $0x1a8] sm:$0xff] %v1710_v43  ;;  %1775 = vst [vmem:[%s3093_s6 + $0x1b0] sm:$0xff] %v1711_v8 }
 0x38f   : > { %1776 = vst [vmem:[%s3093_s6 + $0x1b8] sm:$0xff] %v1712_v44  ;;  %1777 = vst [vmem:[%s3093_s6 + $0x1c0] sm:$0xff] %v1713_v46 }
 0x390   : > { %1778 = vst [vmem:[%s3093_s6 + $0x1c8] sm:$0xff] %v1714_v47  ;;  %1779 = vst [vmem:[%s3093_s6 + $0x1d0] sm:$0xff] %v1715_v48 }
 0x391   : > { %1780 = vst [vmem:[%s3093_s6 + $0x1d8] sm:$0xff] %v1716_v49  ;;  %1781 = vst [vmem:[%s3093_s6 + $0x1e0] sm:$0xff] %v1717_v50 }
 0x392   : > { %1782 = vst [vmem:[%s3093_s6 + $0x1e8] sm:$0xff] %v1718_v51  ;;  %1783 = vst [vmem:[%s3093_s6 + $0x1f0] sm:$0xff] %v1719_v52 }
 0x393   : > { %1784 = vst [vmem:[%s3093_s6 + $0x1f8] sm:$0xff] %v1720_v53 }
 0x394 PF: > { %s3749_s2 = sld [smem:[#allocation24_spill]]  ;;  %s3750_s10 = sld [smem:[#allocation32_spill]] }
 0x395   : > { %s1802_s21 = sshll.u32 %s3093_s6, 4  ;;  %s3751_s23 = sld [smem:[#allocation40_spill]]  ;;  %s3541_s21 = int_to_ptr.vmem [resolvable:$true] %s1802_s21 }
 0x396   : > { %s3550_s3 = scalar_lea.sflag [#allocation6], %s387_s16  ;;  %s2447_s5 = scalar_lea.vmem %s3541_s21, 8192 }
 0x397   : > { %p2448_p10 = scmp.ne.s32.totalorder %s3541_s21, %s2447_s5 }
 0x39a   : > { %s2052_s0 = sshll.u32 %s3749_s2, 7  ;;  %p3753_p5 = scmp.ne.s32.totalorder %s3750_s10, 0 }
 0x39b   : > { %s1799_s15 = sadd.s32 %s2052_s0, %s3076_s22  ;;  %s3752_s17 = smov %s3751_s23 }
 0x39c   : > { %s2044_s29 = sshll.u32 %s1799_s15, 7  ;;  %p2449_p9 = pnand %p2448_p10, %p3753_p5 }
 0x39d   : > { %s3546_s4 = scalar_lea.hbm %s3751_s23, %s2044_s29  ;;  %s2651_s22 = smov [#allocation10]  }
 0x39e   : > { %p2450_p6 = pneg %p2449_p9  ;;  %s2451_s6 = sshll.u32 %s2651_s22, 4  ;;  %s2452_s6 = int_to_ptr.vmem [resolvable:$false] %s2451_s6 }
 0x39f   : > { %s2453_s20 = scalar_lea.vmem %s2452_s6, 16384  ;;  %p2454_p12 = scmp.lt.s32.totalorder %s3541_s21, %s2452_s6 }
 0x3a0   : > { %p2455_p3 = scmp.lt.s32.totalorder %s2453_s20, %s2447_s5 }
 0x3a2   : > { %p2456_p4 = por %p2455_p3, %p2454_p12 }
 0x3a4   : > { %p2457_p1 = pnand %p2456_p4, %p2450_p6 }
 0x3a6   : > { %2460 = shalt.err (!%p2457_p1)
}
 0x3a7   : > { %s2461_s16 = scalar_lea.hbm %s3546_s4, 8192  ;;  %s2465_s7 = scalar_lea.hbm %s3752_s17, 32768 }
 0x3a8   : > { %p2462_p13 = scmp.ne.s32.totalorder %s3546_s4, %s2461_s16  ;;  %p2466_p2 = scmp.lt.u32.totalorder %s3546_s4, %s3752_s17 }
 0x3a9   : > { %p2467_p0 = scmp.lt.u32.totalorder %s2465_s7, %s2461_s16  ;;  %p2469_p10 = scmp.lt.u32.totalorder %s2461_s16, %s3546_s4 }
 0x3aa   : > { %p2463_p8 = pnand %p2462_p13, %p3753_p5 }
 0x3ab   : > { %p2468_p7 = por %p2467_p0, %p2466_p2 }
 0x3ac   : > { %p2464_p11 = pneg %p2463_p8 }
 0x3ad   : > { %p2470_p9 = por %p2469_p10, %p2468_p7 }
 0x3af   : > { %p2471_p6 = pnand %p2470_p9, %p2464_p11 }
 0x3b1   : > { %2474 = shalt.err (!%p2471_p6)
}
 0x3b2   : > { %s2652_s26 = smov 256   ;;  %s2653_s30 = smov 512  }
 0x3b3   : > { %s2654_s2 = smov 16  }
 0x3b4   : > { %2107 = dma.vmem_to_hbm [thread:$0]  (%p3753_p5), %s3541_s21, 8192, %s3546_s4, %s3550_s3, %s2652_s26, %s2653_s30, %s2654_s2  }
 0x3b5 PF: > { %s3754_s0 = sld [smem:[#allocation15_spill]]  ;;  %s3755_s15 = sld [smem:[#allocation33_spill]] }
 0x3b6   : > { %p2124_p12 = scmp.ge.s32.totalorder %s2641_s11, 2 }
 0x3bb   : > { %s1817_s29 = sand.u32 1, %s3754_s0   ;;  %p3756_p3 = scmp.ne.s32.totalorder %s3755_s15, 0 }
 0x3bc   : > { %s1818_s13 = scalar_lea.sflag [#allocation6], %s1817_s29 }
 0x3bd   : > { %p2120_p4 = pnand %p2124_p12, %p3756_p3 }
 0x3bf   : > { %2564 = dma.done.wait (!%p2120_p4), %s1818_s13, 8192  }
 0x3c0   : > { %2566 = vsyncadd (!%p2120_p4), %s1818_s13, 4294959104  ;;  %s24_s11 = sadd.s32 1, %s2641_s11   ;;  %s3759_s10 = sld [smem:[#allocation16_spill]] }
 0x3c1   : > { %p3579_p1 = scmp.ge.s32.totalorder %s24_s11, 10   ;;  %s3760_s20 = sld [smem:[#allocation31_spill]] }
 0x3c2   : > { %s3761_s21 = sld [smem:[#allocation18_spill]]  ;;  %s3762_s22 = sld [smem:[#allocation19_spill]] }
 0x3c3   : > { %s3763_s4 = sld [smem:[#allocation34_spill]]  ;;  %s3764_s3 = sld [smem:[#allocation20_spill]] }
 0x3c4   : > { %s3765_s26 = sld [smem:[#allocation28_spill]]  ;;  %s3766_s5 = sld [smem:[#allocation21_spill]] }
 0x3c5   : > { %s3767_s29 = sld [smem:[#allocation30_spill]]  ;;  %s3768_s7 = sld [smem:[#allocation25_spill]] }
 0x3c6   : > { %s3769_s16 = sld [smem:[#allocation26_spill]]  ;;  %s3770_s18 = smov %s2573_s19 }
 0x3c7   : > { %s3771_s12 = sld [smem:[#allocation27_spill]]  ;;  %s3772_s19 = smov %s3759_s10 }
 0x3c8   : > { %s3773_s10 = sld [smem:[#allocation29_spill]]  ;;  %s3776_s24 = smov %s2597_s25 }
 0x3c9   : > { %s3775_s23 = smov %s3763_s4  ;;  %s3777_s25 = smov %s3764_s3 }
 0x3ca   : > { %s3778_s27 = smov %s2609_s28  ;;  %s3779_s28 = smov %s3766_s5 }
 0x3cb   : > { %s3780_s30 = smov %s2629_s8  ;;  %s3781_s6 = smov %s2633_s9 }
 0x3cc   : > { %s3782_s8 = smov %s3769_s16  ;;  %23 = sbr.rel (!%p3579_p1) target bundleno = 22 (0x16), region = 129 }
 0x3cd   : > { %s3783_s9 = smov %s3771_s12 }
 0x3d3   :  { %1823 = vsyncpa [#allocation5], 1 }
 0x3d4   :  { %1825 = vsyncpa [#allocation5 + $0x1], 1 }
 0x3d5   :  { %1826 = vsyncpa [#allocation8], 1 }
 0x3d6   :  { %1828 = vsyncpa [#allocation8 + $0x1], 1 }
 0x3d7   :  { %1829 = vsyncpa [#allocation6], 1 }
 0x3d8   :  { %1831 = vsyncpa [#allocation6 + $0x1], 1 }

</bundles_post_ra>
